<compile_context>
chip_gen: v6e
topology: v6e:2x2x1
jax: 0.10.0
libtpu: 0.0.40
codegen_flags: <defaults>
</compile_context>

<pallas_src>
import functools

import jax
import jax.numpy as jnp
import numpy as np
from jax.experimental import pallas as pl
from jax.experimental.pallas import tpu as pltpu


# ---------------- in-kernel conv1 + im2col for conv2 ----------------

def _conv_taps(x_ref, w1_ref, b1_ref, l2):
    """conv1(1->16, k=4, s=2, p=1) + LeakyReLU(0.2) evaluated at the four conv1 positions
    (2l-1, 2l, 2l+1, 2l+2) feeding conv2 output l, for every (sample, l) in the block.

    x_ref holds x2[n, q, r] = x_ext[n, 4q + r], where x_ext is the signal zero-padded with
    3 zeros left / 5 right, so every tap is a static contiguous slice (no rolls, no strided
    loads, no halo).  Returns the conv2 im2col block (SB, L2, 64), tap-major on lanes, with
    the conv2 zero-padding (outer taps at l == 0 / l == L2-1) already masked in-kernel.
    """
    w1 = w1_ref[...]                      # (4, 16)  taps x out-channels
    b1 = b1_ref[...]                      # (1, 16)

    # Signal planes: plane(d, r)[n, l] = x_ext[n, 4*(l + d) + r].
    p = {(d, r): x_ref[:, d:d + l2, r:r + 1]          # (SB, L2, 1)
         for d in range(3) for r in range(4)}

    def conv1(a, b, c, d):                # K=4 would underfill the MXU -> 4 broadcast FMAs (VPU)
        h = (a * w1[0:1, :] + b * w1[1:2, :] + c * w1[2:3, :] + d * w1[3:4, :]) + b1
        return jnp.maximum(h, 0.2 * h)    # LeakyReLU(0.2)

    tap0 = conv1(p[0, 0], p[0, 1], p[0, 2], p[0, 3])   # conv1 @ 2l-1
    tap1 = conv1(p[0, 2], p[0, 3], p[1, 0], p[1, 1])   # conv1 @ 2l
    tap2 = conv1(p[1, 0], p[1, 1], p[1, 2], p[1, 3])   # conv1 @ 2l+1
    tap3 = conv1(p[1, 2], p[1, 3], p[2, 0], p[2, 1])   # conv1 @ 2l+2

    p2 = jnp.concatenate([tap0, tap1, tap2, tap3], axis=2)   # (SB, L2, 64)

    # conv2 padding: taps at conv1 positions -1 (l == 0) and Lh (l == L2-1) are zeros, not
    # conv1-of-padding.  Masks generated in-kernel from iota (no (R, 1) HBM mask arrays).
    l_idx = jax.lax.broadcasted_iota(jnp.int32, (1, l2, 64), 1)
    k_idx = jax.lax.broadcasted_iota(jnp.int32, (1, l2, 64), 2)
    kill = jnp.logical_or(jnp.logical_and(l_idx == 0, k_idx < 16),
                          jnp.logical_and(l_idx == l2 - 1, k_idx >= 48))
    return jnp.where(kill, 0.0, p2)


# ---------------- pass 1: BatchNorm sum / sum-of-squares ----------------

def _disc_stats_kernel(x_ref, w1_ref, b1_ref, w2_ref, b2_ref, stats_ref, *, sb, l2):
    p2 = _conv_taps(x_ref, w1_ref, b1_ref, l2)            # (SB, L2, 64)
    w2 = w2_ref[...]                                      # (64, 32) tap-major, shared
    b2 = b2_ref[...]                                      # (1, 32)

    ssum = jnp.zeros((1, 32), jnp.float32)
    ssq = jnp.zeros((1, 32), jnp.float32)
    for n in range(sb):                                   # static unroll over samples in the tile
        s_n = jnp.dot(p2[n], w2, preferred_element_type=jnp.float32) + b2   # conv2, (L2, 32)
        ssum = ssum + jnp.sum(s_n, axis=0, keepdims=True)
        ssq = ssq + jnp.sum(s_n * s_n, axis=0, keepdims=True)

    @pl.when(pl.program_id(0) == 0)
    def _init():
        stats_ref[...] = jnp.zeros_like(stats_ref)

    stats_ref[...] = stats_ref[...] + jnp.concatenate([ssum, ssq], axis=0)


# ---------------- pass 2: recompute, fold BN, LeakyReLU, Flatten+Linear, Sigmoid ----------------

def _disc_main_kernel(x_ref, w1_ref, b1_ref, w2_ref, b2_ref, scale_ref, shift_ref,
                      wl_ref, bl_ref, o_ref, *, sb, l2):
    p2 = _conv_taps(x_ref, w1_ref, b1_ref, l2)            # recompute (cheaper than HBM staging)
    w2 = w2_ref[...]
    b2 = b2_ref[...]
    scale = scale_ref[...]                                # (1, 32) = gamma * rsqrt(var + eps)
    shift = shift_ref[...]                                # (1, 32) = beta - mean * scale
    wl = wl_ref[...]                                      # (L2, 32) resident linear-weight slab
    bl = bl_ref[...]                                      # (1, 1)

    logits = []
    for n in range(sb):                                   # static unroll over samples in the tile
        s_n = jnp.dot(p2[n], w2, preferred_element_type=jnp.float32) + b2   # conv2, (L2, 32)
        z_n = s_n * scale + shift                         # BatchNorm1d (batch stats, folded)
        z_n = jnp.maximum(z_n, 0.2 * z_n)                 # LeakyReLU(0.2)
        logits.append(jnp.sum(z_n * wl, keepdims=True) + bl)   # Flatten + Linear -> (1, 1)

    logit_row = jnp.concatenate(logits, axis=1)           # (1, SB)
    o_ref[...] = (1.0 / (1.0 + jnp.exp(-logit_row)))[None, :, :]   # Sigmoid, (1, 1, SB)


# ---------------- wrapper ----------------

def _pick_sb(n, l2, target_rows=1024, max_unroll=16):
    """Samples per grid step (divisor of N).  The per-sample tail is statically unrolled, so
    cap it; aim for ~target_rows (sample, position) rows per tile to give the pipeline work."""
    cap = max(1, min(max_unroll, max(1, target_rows // max(l2, 1))))
    sb = 1
    for d in range(1, min(n, cap) + 1):
        if n % d == 0:
            sb = d
    return sb


def discriminator_forward(x, params):
    """Discriminator(vah_dim) forward for x of shape (N, 1, L = vah_dim)."""
    N, C, L = x.shape
    assert C == 1 and L % 4 == 0, "Discriminator kernel expects 1 channel and L % 4 == 0"
    L2 = L // 4                      # conv2 output length
    Q = L2 + 2                       # per-sample rows of the reshaped signal view
    SB = _pick_sb(N, L2)             # samples per grid step (tiles sample-aligned -> no halo)
    T = N // SB

    # Compact signal view: x2[n, q, r] = x_ext[n, 4q + r]; ~raw-signal HBM bytes, no im2col dup.
    xsig = x[:, 0, :].astype(jnp.float32)
    x2 = jnp.pad(xsig, ((0, 0), (3, 5))).reshape(N, Q, 4)

    w1t = params["w1"][:, 0, :].T.astype(jnp.float32)                         # (4, 16)
    b1 = params["b1"].reshape(1, 16).astype(jnp.float32)
    w2m = params["w2"].transpose(2, 1, 0).reshape(64, 32).astype(jnp.float32)  # tap-major (64, 32)
    b2 = params["b2"].reshape(1, 32).astype(jnp.float32)
    # PyTorch Flatten is channel-major (flat = c*L2 + l): one (L2, 32) slab, kept VMEM-resident.
    wl_slab = params["wl"][0].reshape(32, L2).T.astype(jnp.float32)           # (L2, 32)
    bl = params["bl"].reshape(1, 1).astype(jnp.float32)

    def resident(shape):             # whole array, constant block index -> DMA'd once, stays put
        return pl.BlockSpec(shape, lambda i: (0,) * len(shape))

    x_spec = pl.BlockSpec((SB, Q, 4), lambda i: (i, 0, 0))
    vmem_cap = 32 * 1024 * 1024      # within the scoped limit on v5e / v6e / v7x

    # Pass 1: per-channel sum / sum-of-squares of the pre-BN conv2 output (reduction axis).
    stats = pl.pallas_call(
        functools.partial(_disc_stats_kernel, sb=SB, l2=L2),
        out_shape=jax.ShapeDtypeStruct((2, 32), jnp.float32),
        grid=(T,),
        in_specs=[x_spec, resident((4, 16)), resident((1, 16)),
                  resident((64, 32)), resident((1, 32))],
        out_specs=pl.BlockSpec((2, 32), lambda i: (0, 0)),
        compiler_params=pltpu.CompilerParams(dimension_semantics=("arbitrary",),
                                             vmem_limit_bytes=vmem_cap),
    )(x2, w1t, b1, w2m, b2)

    rows = float(N * L2)
    mean = stats[0:1, :] / rows
    var = stats[1:2, :] / rows - mean * mean               # biased (training-mode) variance
    inv = jax.lax.rsqrt(var + 1e-5)
    scale = params["gamma"].reshape(1, 32).astype(jnp.float32) * inv
    shift = params["beta"].reshape(1, 32).astype(jnp.float32) - mean * scale

    # Pass 2: independent tiles -> 'parallel' (v7x splits the grid across its two TensorCores).
    out = pl.pallas_call(
        functools.partial(_disc_main_kernel, sb=SB, l2=L2),
        out_shape=jax.ShapeDtypeStruct((T, 1, SB), jnp.float32),
        grid=(T,),
        in_specs=[x_spec, resident((4, 16)), resident((1, 16)),
                  resident((64, 32)), resident((1, 32)),
                  resident((1, 32)), resident((1, 32)),
                  resident((L2, 32)), resident((1, 1))],
        out_specs=pl.BlockSpec((1, 1, SB), lambda i: (i, 0, 0)),
        compiler_params=pltpu.CompilerParams(dimension_semantics=("parallel",),
                                             vmem_limit_bytes=vmem_cap),
    )(x2, w1t, b1, w2m, b2, scale, shift, wl_slab, bl)

    return out.reshape(N, 1)


# ---------------- pure-JAX reference (independent check via lax.conv) ----------------

def reference_forward(x, params):
    dn = ("NCH", "OIH", "NCH")
    prec = jax.lax.Precision.HIGHEST
    h = jax.lax.conv_general_dilated(x, params["w1"], (2,), [(1, 1)],
                                     dimension_numbers=dn, precision=prec)
    h = h + params["b1"][None, :, None]
    h = jnp.where(h > 0, h, 0.2 * h)
    h = jax.lax.conv_general_dilated(h, params["w2"], (2,), [(1, 1)],
                                     dimension_numbers=dn, precision=prec)
    h = h + params["b2"][None, :, None]
    mean = jnp.mean(h, axis=(0, 2), keepdims=True)
    var = jnp.mean((h - mean) ** 2, axis=(0, 2), keepdims=True)
    h = (h - mean) * jax.lax.rsqrt(var + 1e-5)
    h = h * params["gamma"][None, :, None] + params["beta"][None, :, None]
    h = jnp.where(h > 0, h, 0.2 * h)
    flat = h.reshape(h.shape[0], -1)
    logit = jnp.dot(flat, params["wl"].T, precision=prec) + params["bl"][None, :]
    return 1.0 / (1.0 + jnp.exp(-logit))


if __name__ == "__main__":
    vah_dim = 16
    N = 2

    key = jax.random.PRNGKey(0)
    kx, k1, k2, k3, k4, k5, k6 = jax.random.split(key, 7)
    F = 32 * (vah_dim // 4)
    params = {
        "w1": 0.1 * jax.random.normal(k1, (16, 1, 4), jnp.float32),
        "b1": 0.1 * jax.random.normal(k2, (16,), jnp.float32),
        "w2": 0.1 * jax.random.normal(k3, (32, 16, 4), jnp.float32),
        "b2": 0.1 * jax.random.normal(k4, (32,), jnp.float32),
        "gamma": jnp.ones((32,), jnp.float32),   # BatchNorm1d default init
        "beta": jnp.zeros((32,), jnp.float32),
        "wl": 0.1 * jax.random.normal(k5, (1, F), jnp.float32),
        "bl": 0.1 * jax.random.normal(k6, (1,), jnp.float32),
    }

    x = jax.random.normal(kx, (N, 1, vah_dim), jnp.float32)

    out = jax.block_until_ready(jax.jit(discriminator_forward)(x, params))
    ref = jax.block_until_ready(reference_forward(x, params))

    assert out.shape == (N, 1)
    np.testing.assert_allclose(np.asarray(out), np.asarray(ref), rtol=1e-4, atol=1e-5)

    print("KERNEL_OK")
</pallas_src>

<mosaic_0001>
module attributes {stable_mosaic.version = 11 : i64} {
  func.func @_disc_stats_kernel(%arg0: i32, %arg1: memref<2x6x4xf32, #tpu.memory_space<vmem>>, %arg2: memref<4x16xf32, #tpu.memory_space<vmem>>, %arg3: memref<1x16xf32, #tpu.memory_space<vmem>>, %arg4: memref<64x32xf32, #tpu.memory_space<vmem>>, %arg5: memref<1x32xf32, #tpu.memory_space<vmem>>, %arg6: memref<2x32xf32, #tpu.memory_space<vmem>>) attributes {dimension_semantics = [#tpu.dimension_semantics<arbitrary>], iteration_bounds = array<i64: 1>, scalar_prefetch = 0 : i64, scratch_operands = 0 : i64, tpu.core_type = #tpu.core_type<tc>, window_params = [{transform_indices = @transform_0, window_bounds = array<i64: 2, 6, 4>}, {pipeline_mode = #tpu.pipeline_mode<synchronous>, transform_indices = @transform_1, window_bounds = array<i64: 4, 16>}, {pipeline_mode = #tpu.pipeline_mode<synchronous>, transform_indices = @transform_2, window_bounds = array<i64: 1, 16>}, {pipeline_mode = #tpu.pipeline_mode<synchronous>, transform_indices = @transform_3, window_bounds = array<i64: 64, 32>}, {pipeline_mode = #tpu.pipeline_mode<synchronous>, transform_indices = @transform_4, window_bounds = array<i64: 1, 32>}, {pipeline_mode = #tpu.pipeline_mode<synchronous>, transform_indices = @transform_5, window_bounds = array<i64: 2, 32>}]} {
    %c0 = arith.constant 0 : index
    %c0_0 = arith.constant 0 : index
    %0 = vector.load %arg2[%c0, %c0_0] : memref<4x16xf32, #tpu.memory_space<vmem>>, vector<4x16xf32>
    %c0_1 = arith.constant 0 : index
    %c0_2 = arith.constant 0 : index
    %1 = vector.load %arg3[%c0_1, %c0_2] : memref<1x16xf32, #tpu.memory_space<vmem>>, vector<1x16xf32>
    %c0_3 = arith.constant 0 : index
    %c0_4 = arith.constant 0 : index
    %c0_5 = arith.constant 0 : index
    %2 = vector.load %arg1[%c0_3, %c0_4, %c0_5] : memref<2x6x4xf32, #tpu.memory_space<vmem>>, vector<2x4x1xf32>
    %c0_6 = arith.constant 0 : index
    %c0_7 = arith.constant 0 : index
    %c1 = arith.constant 1 : index
    %3 = vector.load %arg1[%c0_6, %c0_7, %c1] : memref<2x6x4xf32, #tpu.memory_space<vmem>>, vector<2x4x1xf32>
    %c0_8 = arith.constant 0 : index
    %c0_9 = arith.constant 0 : index
    %c2 = arith.constant 2 : index
    %4 = vector.load %arg1[%c0_8, %c0_9, %c2] : memref<2x6x4xf32, #tpu.memory_space<vmem>>, vector<2x4x1xf32>
    %c0_10 = arith.constant 0 : index
    %c0_11 = arith.constant 0 : index
    %c3 = arith.constant 3 : index
    %5 = vector.load %arg1[%c0_10, %c0_11, %c3] : memref<2x6x4xf32, #tpu.memory_space<vmem>>, vector<2x4x1xf32>
    %c0_12 = arith.constant 0 : index
    %c1_13 = arith.constant 1 : index
    %c0_14 = arith.constant 0 : index
    %6 = vector.load %arg1[%c0_12, %c1_13, %c0_14] : memref<2x6x4xf32, #tpu.memory_space<vmem>>, vector<2x4x1xf32>
    %c0_15 = arith.constant 0 : index
    %c1_16 = arith.constant 1 : index
    %c1_17 = arith.constant 1 : index
    %7 = vector.load %arg1[%c0_15, %c1_16, %c1_17] : memref<2x6x4xf32, #tpu.memory_space<vmem>>, vector<2x4x1xf32>
    %c0_18 = arith.constant 0 : index
    %c1_19 = arith.constant 1 : index
    %c2_20 = arith.constant 2 : index
    %8 = vector.load %arg1[%c0_18, %c1_19, %c2_20] : memref<2x6x4xf32, #tpu.memory_space<vmem>>, vector<2x4x1xf32>
    %c0_21 = arith.constant 0 : index
    %c1_22 = arith.constant 1 : index
    %c3_23 = arith.constant 3 : index
    %9 = vector.load %arg1[%c0_21, %c1_22, %c3_23] : memref<2x6x4xf32, #tpu.memory_space<vmem>>, vector<2x4x1xf32>
    %c0_24 = arith.constant 0 : index
    %c2_25 = arith.constant 2 : index
    %c0_26 = arith.constant 0 : index
    %10 = vector.load %arg1[%c0_24, %c2_25, %c0_26] : memref<2x6x4xf32, #tpu.memory_space<vmem>>, vector<2x4x1xf32>
    %c0_27 = arith.constant 0 : index
    %c2_28 = arith.constant 2 : index
    %c1_29 = arith.constant 1 : index
    %11 = vector.load %arg1[%c0_27, %c2_28, %c1_29] : memref<2x6x4xf32, #tpu.memory_space<vmem>>, vector<2x4x1xf32>
    %12 = vector.extract_strided_slice %0 {offsets = [0, 0], sizes = [1, 16], strides = [1, 1]} : vector<4x16xf32> to vector<1x16xf32>
    %13 = vector.shape_cast %12 : vector<1x16xf32> to vector<1x1x16xf32>
    %14 = vector.broadcast %2 : vector<2x4x1xf32> to vector<2x4x16xf32>
    %15 = vector.broadcast %13 : vector<1x1x16xf32> to vector<2x4x16xf32>
    %16 = arith.mulf %14, %15 : vector<2x4x16xf32>
    %17 = vector.extract_strided_slice %0 {offsets = [1, 0], sizes = [1, 16], strides = [1, 1]} : vector<4x16xf32> to vector<1x16xf32>
    %18 = vector.shape_cast %17 : vector<1x16xf32> to vector<1x1x16xf32>
    %19 = vector.broadcast %3 : vector<2x4x1xf32> to vector<2x4x16xf32>
    %20 = vector.broadcast %18 : vector<1x1x16xf32> to vector<2x4x16xf32>
    %21 = arith.mulf %19, %20 : vector<2x4x16xf32>
    %22 = arith.addf %16, %21 : vector<2x4x16xf32>
    %23 = vector.extract_strided_slice %0 {offsets = [2, 0], sizes = [1, 16], strides = [1, 1]} : vector<4x16xf32> to vector<1x16xf32>
    %24 = vector.shape_cast %23 : vector<1x16xf32> to vector<1x1x16xf32>
    %25 = vector.broadcast %4 : vector<2x4x1xf32> to vector<2x4x16xf32>
    %26 = vector.broadcast %24 : vector<1x1x16xf32> to vector<2x4x16xf32>
    %27 = arith.mulf %25, %26 : vector<2x4x16xf32>
    %28 = arith.addf %22, %27 : vector<2x4x16xf32>
    %29 = vector.extract_strided_slice %0 {offsets = [3, 0], sizes = [1, 16], strides = [1, 1]} : vector<4x16xf32> to vector<1x16xf32>
    %30 = vector.shape_cast %29 : vector<1x16xf32> to vector<1x1x16xf32>
    %31 = vector.broadcast %5 : vector<2x4x1xf32> to vector<2x4x16xf32>
    %32 = vector.broadcast %30 : vector<1x1x16xf32> to vector<2x4x16xf32>
    %33 = arith.mulf %31, %32 : vector<2x4x16xf32>
    %34 = arith.addf %28, %33 : vector<2x4x16xf32>
    %35 = vector.shape_cast %1 : vector<1x16xf32> to vector<1x1x16xf32>
    %36 = vector.broadcast %35 : vector<1x1x16xf32> to vector<2x4x16xf32>
    %37 = arith.addf %34, %36 : vector<2x4x16xf32>
    %cst = arith.constant 2.000000e-01 : f32
    %38 = vector.broadcast %cst : f32 to vector<2x4x16xf32>
    %39 = arith.mulf %38, %37 : vector<2x4x16xf32>
    %40 = arith.maximumf %37, %39 : vector<2x4x16xf32>
    %41 = vector.extract_strided_slice %0 {offsets = [0, 0], sizes = [1, 16], strides = [1, 1]} : vector<4x16xf32> to vector<1x16xf32>
    %42 = vector.shape_cast %41 : vector<1x16xf32> to vector<1x1x16xf32>
    %43 = vector.broadcast %4 : vector<2x4x1xf32> to vector<2x4x16xf32>
    %44 = vector.broadcast %42 : vector<1x1x16xf32> to vector<2x4x16xf32>
    %45 = arith.mulf %43, %44 : vector<2x4x16xf32>
    %46 = vector.extract_strided_slice %0 {offsets = [1, 0], sizes = [1, 16], strides = [1, 1]} : vector<4x16xf32> to vector<1x16xf32>
    %47 = vector.shape_cast %46 : vector<1x16xf32> to vector<1x1x16xf32>
    %48 = vector.broadcast %5 : vector<2x4x1xf32> to vector<2x4x16xf32>
    %49 = vector.broadcast %47 : vector<1x1x16xf32> to vector<2x4x16xf32>
    %50 = arith.mulf %48, %49 : vector<2x4x16xf32>
    %51 = arith.addf %45, %50 : vector<2x4x16xf32>
    %52 = vector.extract_strided_slice %0 {offsets = [2, 0], sizes = [1, 16], strides = [1, 1]} : vector<4x16xf32> to vector<1x16xf32>
    %53 = vector.shape_cast %52 : vector<1x16xf32> to vector<1x1x16xf32>
    %54 = vector.broadcast %6 : vector<2x4x1xf32> to vector<2x4x16xf32>
    %55 = vector.broadcast %53 : vector<1x1x16xf32> to vector<2x4x16xf32>
    %56 = arith.mulf %54, %55 : vector<2x4x16xf32>
    %57 = arith.addf %51, %56 : vector<2x4x16xf32>
    %58 = vector.extract_strided_slice %0 {offsets = [3, 0], sizes = [1, 16], strides = [1, 1]} : vector<4x16xf32> to vector<1x16xf32>
    %59 = vector.shape_cast %58 : vector<1x16xf32> to vector<1x1x16xf32>
    %60 = vector.broadcast %7 : vector<2x4x1xf32> to vector<2x4x16xf32>
    %61 = vector.broadcast %59 : vector<1x1x16xf32> to vector<2x4x16xf32>
    %62 = arith.mulf %60, %61 : vector<2x4x16xf32>
    %63 = arith.addf %57, %62 : vector<2x4x16xf32>
    %64 = vector.shape_cast %1 : vector<1x16xf32> to vector<1x1x16xf32>
    %65 = vector.broadcast %64 : vector<1x1x16xf32> to vector<2x4x16xf32>
    %66 = arith.addf %63, %65 : vector<2x4x16xf32>
    %cst_30 = arith.constant 2.000000e-01 : f32
    %67 = vector.broadcast %cst_30 : f32 to vector<2x4x16xf32>
    %68 = arith.mulf %67, %66 : vector<2x4x16xf32>
    %69 = arith.maximumf %66, %68 : vector<2x4x16xf32>
    %70 = vector.extract_strided_slice %0 {offsets = [0, 0], sizes = [1, 16], strides = [1, 1]} : vector<4x16xf32> to vector<1x16xf32>
    %71 = vector.shape_cast %70 : vector<1x16xf32> to vector<1x1x16xf32>
    %72 = vector.broadcast %6 : vector<2x4x1xf32> to vector<2x4x16xf32>
    %73 = vector.broadcast %71 : vector<1x1x16xf32> to vector<2x4x16xf32>
    %74 = arith.mulf %72, %73 : vector<2x4x16xf32>
    %75 = vector.extract_strided_slice %0 {offsets = [1, 0], sizes = [1, 16], strides = [1, 1]} : vector<4x16xf32> to vector<1x16xf32>
    %76 = vector.shape_cast %75 : vector<1x16xf32> to vector<1x1x16xf32>
    %77 = vector.broadcast %7 : vector<2x4x1xf32> to vector<2x4x16xf32>
    %78 = vector.broadcast %76 : vector<1x1x16xf32> to vector<2x4x16xf32>
    %79 = arith.mulf %77, %78 : vector<2x4x16xf32>
    %80 = arith.addf %74, %79 : vector<2x4x16xf32>
    %81 = vector.extract_strided_slice %0 {offsets = [2, 0], sizes = [1, 16], strides = [1, 1]} : vector<4x16xf32> to vector<1x16xf32>
    %82 = vector.shape_cast %81 : vector<1x16xf32> to vector<1x1x16xf32>
    %83 = vector.broadcast %8 : vector<2x4x1xf32> to vector<2x4x16xf32>
    %84 = vector.broadcast %82 : vector<1x1x16xf32> to vector<2x4x16xf32>
    %85 = arith.mulf %83, %84 : vector<2x4x16xf32>
    %86 = arith.addf %80, %85 : vector<2x4x16xf32>
    %87 = vector.extract_strided_slice %0 {offsets = [3, 0], sizes = [1, 16], strides = [1, 1]} : vector<4x16xf32> to vector<1x16xf32>
    %88 = vector.shape_cast %87 : vector<1x16xf32> to vector<1x1x16xf32>
    %89 = vector.broadcast %9 : vector<2x4x1xf32> to vector<2x4x16xf32>
    %90 = vector.broadcast %88 : vector<1x1x16xf32> to vector<2x4x16xf32>
    %91 = arith.mulf %89, %90 : vector<2x4x16xf32>
    %92 = arith.addf %86, %91 : vector<2x4x16xf32>
    %93 = vector.shape_cast %1 : vector<1x16xf32> to vector<1x1x16xf32>
    %94 = vector.broadcast %93 : vector<1x1x16xf32> to vector<2x4x16xf32>
    %95 = arith.addf %92, %94 : vector<2x4x16xf32>
    %cst_31 = arith.constant 2.000000e-01 : f32
    %96 = vector.broadcast %cst_31 : f32 to vector<2x4x16xf32>
    %97 = arith.mulf %96, %95 : vector<2x4x16xf32>
    %98 = arith.maximumf %95, %97 : vector<2x4x16xf32>
    %99 = vector.extract_strided_slice %0 {offsets = [0, 0], sizes = [1, 16], strides = [1, 1]} : vector<4x16xf32> to vector<1x16xf32>
    %100 = vector.shape_cast %99 : vector<1x16xf32> to vector<1x1x16xf32>
    %101 = vector.broadcast %8 : vector<2x4x1xf32> to vector<2x4x16xf32>
    %102 = vector.broadcast %100 : vector<1x1x16xf32> to vector<2x4x16xf32>
    %103 = arith.mulf %101, %102 : vector<2x4x16xf32>
    %104 = vector.extract_strided_slice %0 {offsets = [1, 0], sizes = [1, 16], strides = [1, 1]} : vector<4x16xf32> to vector<1x16xf32>
    %105 = vector.shape_cast %104 : vector<1x16xf32> to vector<1x1x16xf32>
    %106 = vector.broadcast %9 : vector<2x4x1xf32> to vector<2x4x16xf32>
    %107 = vector.broadcast %105 : vector<1x1x16xf32> to vector<2x4x16xf32>
    %108 = arith.mulf %106, %107 : vector<2x4x16xf32>
    %109 = arith.addf %103, %108 : vector<2x4x16xf32>
    %110 = vector.extract_strided_slice %0 {offsets = [2, 0], sizes = [1, 16], strides = [1, 1]} : vector<4x16xf32> to vector<1x16xf32>
    %111 = vector.shape_cast %110 : vector<1x16xf32> to vector<1x1x16xf32>
    %112 = vector.broadcast %10 : vector<2x4x1xf32> to vector<2x4x16xf32>
    %113 = vector.broadcast %111 : vector<1x1x16xf32> to vector<2x4x16xf32>
    %114 = arith.mulf %112, %113 : vector<2x4x16xf32>
    %115 = arith.addf %109, %114 : vector<2x4x16xf32>
    %116 = vector.extract_strided_slice %0 {offsets = [3, 0], sizes = [1, 16], strides = [1, 1]} : vector<4x16xf32> to vector<1x16xf32>
    %117 = vector.shape_cast %116 : vector<1x16xf32> to vector<1x1x16xf32>
    %118 = vector.broadcast %11 : vector<2x4x1xf32> to vector<2x4x16xf32>
    %119 = vector.broadcast %117 : vector<1x1x16xf32> to vector<2x4x16xf32>
    %120 = arith.mulf %118, %119 : vector<2x4x16xf32>
    %121 = arith.addf %115, %120 : vector<2x4x16xf32>
    %122 = vector.shape_cast %1 : vector<1x16xf32> to vector<1x1x16xf32>
    %123 = vector.broadcast %122 : vector<1x1x16xf32> to vector<2x4x16xf32>
    %124 = arith.addf %121, %123 : vector<2x4x16xf32>
    %cst_32 = arith.constant 2.000000e-01 : f32
    %125 = vector.broadcast %cst_32 : f32 to vector<2x4x16xf32>
    %126 = arith.mulf %125, %124 : vector<2x4x16xf32>
    %127 = arith.maximumf %124, %126 : vector<2x4x16xf32>
    %128 = tpu.concatenate %40, %69, %98, %127 in 2 : vector<2x4x16xf32>, vector<2x4x16xf32>, vector<2x4x16xf32>, vector<2x4x16xf32> -> vector<2x4x64xf32>
    %129 = tpu.iota {dimensions = array<i32: 1>} : vector<1x4x64xi32>
    %130 = tpu.iota {dimensions = array<i32: 2>} : vector<1x4x64xi32>
    %c0_i32 = arith.constant 0 : i32
    %131 = vector.broadcast %c0_i32 : i32 to vector<1x4x64xi32>
    %132 = arith.cmpi eq, %129, %131 : vector<1x4x64xi32>
    %c16_i32 = arith.constant 16 : i32
    %133 = vector.broadcast %c16_i32 : i32 to vector<1x4x64xi32>
    %134 = arith.cmpi slt, %130, %133 : vector<1x4x64xi32>
    %135 = arith.andi %132, %134 : vector<1x4x64xi1>
    %c3_i32 = arith.constant 3 : i32
    %136 = vector.broadcast %c3_i32 : i32 to vector<1x4x64xi32>
    %137 = arith.cmpi eq, %129, %136 : vector<1x4x64xi32>
    %c48_i32 = arith.constant 48 : i32
    %138 = vector.broadcast %c48_i32 : i32 to vector<1x4x64xi32>
    %139 = arith.cmpi sge, %130, %138 : vector<1x4x64xi32>
    %140 = arith.andi %137, %139 : vector<1x4x64xi1>
    %141 = arith.ori %135, %140 : vector<1x4x64xi1>
    %cst_33 = arith.constant 0.000000e+00 : f32
    %142 = vector.shape_cast %141 : vector<1x4x64xi1> to vector<1x4x64xi1>
    %143 = vector.broadcast %142 : vector<1x4x64xi1> to vector<2x4x64xi1>
    %144 = vector.broadcast %cst_33 : f32 to vector<2x4x64xf32>
    %145 = arith.select %143, %144, %128 : vector<2x4x64xi1>, vector<2x4x64xf32>
    %c0_34 = arith.constant 0 : index
    %c0_35 = arith.constant 0 : index
    %146 = vector.load %arg4[%c0_34, %c0_35] : memref<64x32xf32, #tpu.memory_space<vmem>>, vector<64x32xf32>
    %c0_36 = arith.constant 0 : index
    %c0_37 = arith.constant 0 : index
    %147 = vector.load %arg5[%c0_36, %c0_37] : memref<1x32xf32, #tpu.memory_space<vmem>>, vector<1x32xf32>
    %cst_38 = arith.constant 0.000000e+00 : f32
    %148 = vector.broadcast %cst_38 : f32 to vector<1x32xf32>
    %cst_39 = arith.constant 0.000000e+00 : f32
    %149 = vector.broadcast %cst_39 : f32 to vector<1x32xf32>
    %150 = vector.extract_strided_slice %145 {offsets = [0, 0, 0], sizes = [1, 4, 64], strides = [1, 1, 1]} : vector<2x4x64xf32> to vector<1x4x64xf32>
    %151 = vector.shape_cast %150 : vector<1x4x64xf32> to vector<4x64xf32>
    %cst_40 = arith.constant dense<0.000000e+00> : vector<4x32xf32>
    %152 = tpu.matmul %151, %146, %cst_40 {dimension_numbers = #tpu.dot_dimension_numbers<[1], [0], [0], [1], [0, 0, 1, 1], [], []>} : vector<4x64xf32>, vector<64x32xf32>, vector<4x32xf32> -> vector<4x32xf32>
    %153 = vector.broadcast %147 : vector<1x32xf32> to vector<4x32xf32>
    %154 = arith.addf %152, %153 : vector<4x32xf32>
    %cst_41 = arith.constant dense<0.000000e+00> : vector<32xf32>
    %155 = vector.multi_reduction <add>, %154, %cst_41 [0] : vector<4x32xf32> to vector<32xf32>
    %156 = vector.shape_cast %155 : vector<32xf32> to vector<1x32xf32>
    %157 = arith.addf %148, %156 : vector<1x32xf32>
    %158 = arith.mulf %154, %154 : vector<4x32xf32>
    %cst_42 = arith.constant dense<0.000000e+00> : vector<32xf32>
    %159 = vector.multi_reduction <add>, %158, %cst_42 [0] : vector<4x32xf32> to vector<32xf32>
    %160 = vector.shape_cast %159 : vector<32xf32> to vector<1x32xf32>
    %161 = arith.addf %149, %160 : vector<1x32xf32>
    %162 = vector.extract_strided_slice %145 {offsets = [1, 0, 0], sizes = [1, 4, 64], strides = [1, 1, 1]} : vector<2x4x64xf32> to vector<1x4x64xf32>
    %163 = vector.shape_cast %162 : vector<1x4x64xf32> to vector<4x64xf32>
    %cst_43 = arith.constant dense<0.000000e+00> : vector<4x32xf32>
    %164 = tpu.matmul %163, %146, %cst_43 {dimension_numbers = #tpu.dot_dimension_numbers<[1], [0], [0], [1], [0, 0, 1, 1], [], []>} : vector<4x64xf32>, vector<64x32xf32>, vector<4x32xf32> -> vector<4x32xf32>
    %165 = vector.broadcast %147 : vector<1x32xf32> to vector<4x32xf32>
    %166 = arith.addf %164, %165 : vector<4x32xf32>
    %cst_44 = arith.constant dense<0.000000e+00> : vector<32xf32>
    %167 = vector.multi_reduction <add>, %166, %cst_44 [0] : vector<4x32xf32> to vector<32xf32>
    %168 = vector.shape_cast %167 : vector<32xf32> to vector<1x32xf32>
    %169 = arith.addf %157, %168 : vector<1x32xf32>
    %170 = arith.mulf %166, %166 : vector<4x32xf32>
    %cst_45 = arith.constant dense<0.000000e+00> : vector<32xf32>
    %171 = vector.multi_reduction <add>, %170, %cst_45 [0] : vector<4x32xf32> to vector<32xf32>
    %172 = vector.shape_cast %171 : vector<32xf32> to vector<1x32xf32>
    %173 = arith.addf %161, %172 : vector<1x32xf32>
    %c0_i32_46 = arith.constant 0 : i32
    %174 = arith.cmpi eq, %arg0, %c0_i32_46 : i32
    %175 = arith.extui %174 : i1 to i32
    %c0_i32_47 = arith.constant 0 : i32
    %176 = arith.cmpi ne, %175, %c0_i32_47 : i32
    scf.if %176 {
      %cst_52 = arith.constant 0.000000e+00 : f32
      %181 = vector.broadcast %cst_52 : f32 to vector<2x32xf32>
      %c0_53 = arith.constant 0 : index
      %c0_54 = arith.constant 0 : index
      %182 = vector.load %arg6[%c0_53, %c0_54] : memref<2x32xf32, #tpu.memory_space<vmem>>, vector<2x32xf32>
      tpu.vector_store %arg6[%c0_53, %c0_54], %181 {strides = array<i32>} : memref<2x32xf32, #tpu.memory_space<vmem>>, vector<2x32xf32>,
    } else {
    }
    %c0_48 = arith.constant 0 : index
    %c0_49 = arith.constant 0 : index
    %177 = vector.load %arg6[%c0_48, %c0_49] : memref<2x32xf32, #tpu.memory_space<vmem>>, vector<2x32xf32>
    %178 = tpu.concatenate %169, %173 in 0 : vector<1x32xf32>, vector<1x32xf32> -> vector<2x32xf32>
    %179 = arith.addf %177, %178 : vector<2x32xf32>
    %c0_50 = arith.constant 0 : index
    %c0_51 = arith.constant 0 : index
    %180 = vector.load %arg6[%c0_50, %c0_51] : memref<2x32xf32, #tpu.memory_space<vmem>>, vector<2x32xf32>
    tpu.vector_store %arg6[%c0_50, %c0_51], %179 {strides = array<i32>} : memref<2x32xf32, #tpu.memory_space<vmem>>, vector<2x32xf32>,
    return
  }
  func.func @transform_0(%arg0: i32) -> (i32, i32, i32) {
    %c0_i32 = arith.constant 0 : i32
    %c0_i32_0 = arith.constant 0 : i32
    %c0_i32_1 = arith.constant 0 : i32
    return %arg0, %c0_i32, %c0_i32_0 : i32, i32, i32
  }
  func.func @transform_1(%arg0: i32) -> (i32, i32) {
    %c0_i32 = arith.constant 0 : i32
    %c0_i32_0 = arith.constant 0 : i32
    %c0_i32_1 = arith.constant 0 : i32
    return %c0_i32, %c0_i32_0 : i32, i32
  }
  func.func @transform_2(%arg0: i32) -> (i32, i32) {
    %c0_i32 = arith.constant 0 : i32
    %c0_i32_0 = arith.constant 0 : i32
    %c0_i32_1 = arith.constant 0 : i32
    return %c0_i32, %c0_i32_0 : i32, i32
  }
  func.func @transform_3(%arg0: i32) -> (i32, i32) {
    %c0_i32 = arith.constant 0 : i32
    %c0_i32_0 = arith.constant 0 : i32
    %c0_i32_1 = arith.constant 0 : i32
    return %c0_i32, %c0_i32_0 : i32, i32
  }
  func.func @transform_4(%arg0: i32) -> (i32, i32) {
    %c0_i32 = arith.constant 0 : i32
    %c0_i32_0 = arith.constant 0 : i32
    %c0_i32_1 = arith.constant 0 : i32
    return %c0_i32, %c0_i32_0 : i32, i32
  }
  func.func @transform_5(%arg0: i32) -> (i32, i32) {
    %c0_i32 = arith.constant 0 : i32
    %c0_i32_0 = arith.constant 0 : i32
    %c0_i32_1 = arith.constant 0 : i32
    return %c0_i32, %c0_i32_0 : i32, i32
  }
}

module attributes {stable_mosaic.version = 11 : i64} {
  func.func @_disc_main_kernel(%arg0: i32, %arg1: memref<2x6x4xf32, #tpu.memory_space<vmem>>, %arg2: memref<4x16xf32, #tpu.memory_space<vmem>>, %arg3: memref<1x16xf32, #tpu.memory_space<vmem>>, %arg4: memref<64x32xf32, #tpu.memory_space<vmem>>, %arg5: memref<1x32xf32, #tpu.memory_space<vmem>>, %arg6: memref<1x32xf32, #tpu.memory_space<vmem>>, %arg7: memref<1x32xf32, #tpu.memory_space<vmem>>, %arg8: memref<4x32xf32, #tpu.memory_space<vmem>>, %arg9: memref<1x1xf32, #tpu.memory_space<vmem>>, %arg10: memref<1x1x2xf32, #tpu.memory_space<vmem>>) attributes {dimension_semantics = [#tpu.dimension_semantics<parallel>], iteration_bounds = array<i64: 1>, scalar_prefetch = 0 : i64, scratch_operands = 0 : i64, tpu.core_type = #tpu.core_type<tc>, window_params = [{transform_indices = @transform_0, window_bounds = array<i64: 2, 6, 4>}, {pipeline_mode = #tpu.pipeline_mode<synchronous>, transform_indices = @transform_1, window_bounds = array<i64: 4, 16>}, {pipeline_mode = #tpu.pipeline_mode<synchronous>, transform_indices = @transform_2, window_bounds = array<i64: 1, 16>}, {pipeline_mode = #tpu.pipeline_mode<synchronous>, transform_indices = @transform_3, window_bounds = array<i64: 64, 32>}, {pipeline_mode = #tpu.pipeline_mode<synchronous>, transform_indices = @transform_4, window_bounds = array<i64: 1, 32>}, {pipeline_mode = #tpu.pipeline_mode<synchronous>, transform_indices = @transform_5, window_bounds = array<i64: 1, 32>}, {pipeline_mode = #tpu.pipeline_mode<synchronous>, transform_indices = @transform_6, window_bounds = array<i64: 1, 32>}, {pipeline_mode = #tpu.pipeline_mode<synchronous>, transform_indices = @transform_7, window_bounds = array<i64: 4, 32>}, {pipeline_mode = #tpu.pipeline_mode<synchronous>, transform_indices = @transform_8, window_bounds = array<i64: 1, 1>}, {transform_indices = @transform_9, window_bounds = array<i64: 1, 1, 2>}]} {
    %c0 = arith.constant 0 : index
    %c0_0 = arith.constant 0 : index
    %0 = vector.load %arg2[%c0, %c0_0] : memref<4x16xf32, #tpu.memory_space<vmem>>, vector<4x16xf32>
    %c0_1 = arith.constant 0 : index
    %c0_2 = arith.constant 0 : index
    %1 = vector.load %arg3[%c0_1, %c0_2] : memref<1x16xf32, #tpu.memory_space<vmem>>, vector<1x16xf32>
    %c0_3 = arith.constant 0 : index
    %c0_4 = arith.constant 0 : index
    %c0_5 = arith.constant 0 : index
    %2 = vector.load %arg1[%c0_3, %c0_4, %c0_5] : memref<2x6x4xf32, #tpu.memory_space<vmem>>, vector<2x4x1xf32>
    %c0_6 = arith.constant 0 : index
    %c0_7 = arith.constant 0 : index
    %c1 = arith.constant 1 : index
    %3 = vector.load %arg1[%c0_6, %c0_7, %c1] : memref<2x6x4xf32, #tpu.memory_space<vmem>>, vector<2x4x1xf32>
    %c0_8 = arith.constant 0 : index
    %c0_9 = arith.constant 0 : index
    %c2 = arith.constant 2 : index
    %4 = vector.load %arg1[%c0_8, %c0_9, %c2] : memref<2x6x4xf32, #tpu.memory_space<vmem>>, vector<2x4x1xf32>
    %c0_10 = arith.constant 0 : index
    %c0_11 = arith.constant 0 : index
    %c3 = arith.constant 3 : index
    %5 = vector.load %arg1[%c0_10, %c0_11, %c3] : memref<2x6x4xf32, #tpu.memory_space<vmem>>, vector<2x4x1xf32>
    %c0_12 = arith.constant 0 : index
    %c1_13 = arith.constant 1 : index
    %c0_14 = arith.constant 0 : index
    %6 = vector.load %arg1[%c0_12, %c1_13, %c0_14] : memref<2x6x4xf32, #tpu.memory_space<vmem>>, vector<2x4x1xf32>
    %c0_15 = arith.constant 0 : index
    %c1_16 = arith.constant 1 : index
    %c1_17 = arith.constant 1 : index
    %7 = vector.load %arg1[%c0_15, %c1_16, %c1_17] : memref<2x6x4xf32, #tpu.memory_space<vmem>>, vector<2x4x1xf32>
    %c0_18 = arith.constant 0 : index
    %c1_19 = arith.constant 1 : index
    %c2_20 = arith.constant 2 : index
    %8 = vector.load %arg1[%c0_18, %c1_19, %c2_20] : memref<2x6x4xf32, #tpu.memory_space<vmem>>, vector<2x4x1xf32>
    %c0_21 = arith.constant 0 : index
    %c1_22 = arith.constant 1 : index
    %c3_23 = arith.constant 3 : index
    %9 = vector.load %arg1[%c0_21, %c1_22, %c3_23] : memref<2x6x4xf32, #tpu.memory_space<vmem>>, vector<2x4x1xf32>
    %c0_24 = arith.constant 0 : index
    %c2_25 = arith.constant 2 : index
    %c0_26 = arith.constant 0 : index
    %10 = vector.load %arg1[%c0_24, %c2_25, %c0_26] : memref<2x6x4xf32, #tpu.memory_space<vmem>>, vector<2x4x1xf32>
    %c0_27 = arith.constant 0 : index
    %c2_28 = arith.constant 2 : index
    %c1_29 = arith.constant 1 : index
    %11 = vector.load %arg1[%c0_27, %c2_28, %c1_29] : memref<2x6x4xf32, #tpu.memory_space<vmem>>, vector<2x4x1xf32>
    %12 = vector.extract_strided_slice %0 {offsets = [0, 0], sizes = [1, 16], strides = [1, 1]} : vector<4x16xf32> to vector<1x16xf32>
    %13 = vector.shape_cast %12 : vector<1x16xf32> to vector<1x1x16xf32>
    %14 = vector.broadcast %2 : vector<2x4x1xf32> to vector<2x4x16xf32>
    %15 = vector.broadcast %13 : vector<1x1x16xf32> to vector<2x4x16xf32>
    %16 = arith.mulf %14, %15 : vector<2x4x16xf32>
    %17 = vector.extract_strided_slice %0 {offsets = [1, 0], sizes = [1, 16], strides = [1, 1]} : vector<4x16xf32> to vector<1x16xf32>
    %18 = vector.shape_cast %17 : vector<1x16xf32> to vector<1x1x16xf32>
    %19 = vector.broadcast %3 : vector<2x4x1xf32> to vector<2x4x16xf32>
    %20 = vector.broadcast %18 : vector<1x1x16xf32> to vector<2x4x16xf32>
    %21 = arith.mulf %19, %20 : vector<2x4x16xf32>
    %22 = arith.addf %16, %21 : vector<2x4x16xf32>
    %23 = vector.extract_strided_slice %0 {offsets = [2, 0], sizes = [1, 16], strides = [1, 1]} : vector<4x16xf32> to vector<1x16xf32>
    %24 = vector.shape_cast %23 : vector<1x16xf32> to vector<1x1x16xf32>
    %25 = vector.broadcast %4 : vector<2x4x1xf32> to vector<2x4x16xf32>
    %26 = vector.broadcast %24 : vector<1x1x16xf32> to vector<2x4x16xf32>
    %27 = arith.mulf %25, %26 : vector<2x4x16xf32>
    %28 = arith.addf %22, %27 : vector<2x4x16xf32>
    %29 = vector.extract_strided_slice %0 {offsets = [3, 0], sizes = [1, 16], strides = [1, 1]} : vector<4x16xf32> to vector<1x16xf32>
    %30 = vector.shape_cast %29 : vector<1x16xf32> to vector<1x1x16xf32>
    %31 = vector.broadcast %5 : vector<2x4x1xf32> to vector<2x4x16xf32>
    %32 = vector.broadcast %30 : vector<1x1x16xf32> to vector<2x4x16xf32>
    %33 = arith.mulf %31, %32 : vector<2x4x16xf32>
    %34 = arith.addf %28, %33 : vector<2x4x16xf32>
    %35 = vector.shape_cast %1 : vector<1x16xf32> to vector<1x1x16xf32>
    %36 = vector.broadcast %35 : vector<1x1x16xf32> to vector<2x4x16xf32>
    %37 = arith.addf %34, %36 : vector<2x4x16xf32>
    %cst = arith.constant 2.000000e-01 : f32
    %38 = vector.broadcast %cst : f32 to vector<2x4x16xf32>
    %39 = arith.mulf %38, %37 : vector<2x4x16xf32>
    %40 = arith.maximumf %37, %39 : vector<2x4x16xf32>
    %41 = vector.extract_strided_slice %0 {offsets = [0, 0], sizes = [1, 16], strides = [1, 1]} : vector<4x16xf32> to vector<1x16xf32>
    %42 = vector.shape_cast %41 : vector<1x16xf32> to vector<1x1x16xf32>
    %43 = vector.broadcast %4 : vector<2x4x1xf32> to vector<2x4x16xf32>
    %44 = vector.broadcast %42 : vector<1x1x16xf32> to vector<2x4x16xf32>
    %45 = arith.mulf %43, %44 : vector<2x4x16xf32>
    %46 = vector.extract_strided_slice %0 {offsets = [1, 0], sizes = [1, 16], strides = [1, 1]} : vector<4x16xf32> to vector<1x16xf32>
    %47 = vector.shape_cast %46 : vector<1x16xf32> to vector<1x1x16xf32>
    %48 = vector.broadcast %5 : vector<2x4x1xf32> to vector<2x4x16xf32>
    %49 = vector.broadcast %47 : vector<1x1x16xf32> to vector<2x4x16xf32>
    %50 = arith.mulf %48, %49 : vector<2x4x16xf32>
    %51 = arith.addf %45, %50 : vector<2x4x16xf32>
    %52 = vector.extract_strided_slice %0 {offsets = [2, 0], sizes = [1, 16], strides = [1, 1]} : vector<4x16xf32> to vector<1x16xf32>
    %53 = vector.shape_cast %52 : vector<1x16xf32> to vector<1x1x16xf32>
    %54 = vector.broadcast %6 : vector<2x4x1xf32> to vector<2x4x16xf32>
    %55 = vector.broadcast %53 : vector<1x1x16xf32> to vector<2x4x16xf32>
    %56 = arith.mulf %54, %55 : vector<2x4x16xf32>
    %57 = arith.addf %51, %56 : vector<2x4x16xf32>
    %58 = vector.extract_strided_slice %0 {offsets = [3, 0], sizes = [1, 16], strides = [1, 1]} : vector<4x16xf32> to vector<1x16xf32>
    %59 = vector.shape_cast %58 : vector<1x16xf32> to vector<1x1x16xf32>
    %60 = vector.broadcast %7 : vector<2x4x1xf32> to vector<2x4x16xf32>
    %61 = vector.broadcast %59 : vector<1x1x16xf32> to vector<2x4x16xf32>
    %62 = arith.mulf %60, %61 : vector<2x4x16xf32>
    %63 = arith.addf %57, %62 : vector<2x4x16xf32>
    %64 = vector.shape_cast %1 : vector<1x16xf32> to vector<1x1x16xf32>
    %65 = vector.broadcast %64 : vector<1x1x16xf32> to vector<2x4x16xf32>
    %66 = arith.addf %63, %65 : vector<2x4x16xf32>
    %cst_30 = arith.constant 2.000000e-01 : f32
    %67 = vector.broadcast %cst_30 : f32 to vector<2x4x16xf32>
    %68 = arith.mulf %67, %66 : vector<2x4x16xf32>
    %69 = arith.maximumf %66, %68 : vector<2x4x16xf32>
    %70 = vector.extract_strided_slice %0 {offsets = [0, 0], sizes = [1, 16], strides = [1, 1]} : vector<4x16xf32> to vector<1x16xf32>
    %71 = vector.shape_cast %70 : vector<1x16xf32> to vector<1x1x16xf32>
    %72 = vector.broadcast %6 : vector<2x4x1xf32> to vector<2x4x16xf32>
    %73 = vector.broadcast %71 : vector<1x1x16xf32> to vector<2x4x16xf32>
    %74 = arith.mulf %72, %73 : vector<2x4x16xf32>
    %75 = vector.extract_strided_slice %0 {offsets = [1, 0], sizes = [1, 16], strides = [1, 1]} : vector<4x16xf32> to vector<1x16xf32>
    %76 = vector.shape_cast %75 : vector<1x16xf32> to vector<1x1x16xf32>
    %77 = vector.broadcast %7 : vector<2x4x1xf32> to vector<2x4x16xf32>
    %78 = vector.broadcast %76 : vector<1x1x16xf32> to vector<2x4x16xf32>
    %79 = arith.mulf %77, %78 : vector<2x4x16xf32>
    %80 = arith.addf %74, %79 : vector<2x4x16xf32>
    %81 = vector.extract_strided_slice %0 {offsets = [2, 0], sizes = [1, 16], strides = [1, 1]} : vector<4x16xf32> to vector<1x16xf32>
    %82 = vector.shape_cast %81 : vector<1x16xf32> to vector<1x1x16xf32>
    %83 = vector.broadcast %8 : vector<2x4x1xf32> to vector<2x4x16xf32>
    %84 = vector.broadcast %82 : vector<1x1x16xf32> to vector<2x4x16xf32>
    %85 = arith.mulf %83, %84 : vector<2x4x16xf32>
    %86 = arith.addf %80, %85 : vector<2x4x16xf32>
    %87 = vector.extract_strided_slice %0 {offsets = [3, 0], sizes = [1, 16], strides = [1, 1]} : vector<4x16xf32> to vector<1x16xf32>
    %88 = vector.shape_cast %87 : vector<1x16xf32> to vector<1x1x16xf32>
    %89 = vector.broadcast %9 : vector<2x4x1xf32> to vector<2x4x16xf32>
    %90 = vector.broadcast %88 : vector<1x1x16xf32> to vector<2x4x16xf32>
    %91 = arith.mulf %89, %90 : vector<2x4x16xf32>
    %92 = arith.addf %86, %91 : vector<2x4x16xf32>
    %93 = vector.shape_cast %1 : vector<1x16xf32> to vector<1x1x16xf32>
    %94 = vector.broadcast %93 : vector<1x1x16xf32> to vector<2x4x16xf32>
    %95 = arith.addf %92, %94 : vector<2x4x16xf32>
    %cst_31 = arith.constant 2.000000e-01 : f32
    %96 = vector.broadcast %cst_31 : f32 to vector<2x4x16xf32>
    %97 = arith.mulf %96, %95 : vector<2x4x16xf32>
    %98 = arith.maximumf %95, %97 : vector<2x4x16xf32>
    %99 = vector.extract_strided_slice %0 {offsets = [0, 0], sizes = [1, 16], strides = [1, 1]} : vector<4x16xf32> to vector<1x16xf32>
    %100 = vector.shape_cast %99 : vector<1x16xf32> to vector<1x1x16xf32>
    %101 = vector.broadcast %8 : vector<2x4x1xf32> to vector<2x4x16xf32>
    %102 = vector.broadcast %100 : vector<1x1x16xf32> to vector<2x4x16xf32>
    %103 = arith.mulf %101, %102 : vector<2x4x16xf32>
    %104 = vector.extract_strided_slice %0 {offsets = [1, 0], sizes = [1, 16], strides = [1, 1]} : vector<4x16xf32> to vector<1x16xf32>
    %105 = vector.shape_cast %104 : vector<1x16xf32> to vector<1x1x16xf32>
    %106 = vector.broadcast %9 : vector<2x4x1xf32> to vector<2x4x16xf32>
    %107 = vector.broadcast %105 : vector<1x1x16xf32> to vector<2x4x16xf32>
    %108 = arith.mulf %106, %107 : vector<2x4x16xf32>
    %109 = arith.addf %103, %108 : vector<2x4x16xf32>
    %110 = vector.extract_strided_slice %0 {offsets = [2, 0], sizes = [1, 16], strides = [1, 1]} : vector<4x16xf32> to vector<1x16xf32>
    %111 = vector.shape_cast %110 : vector<1x16xf32> to vector<1x1x16xf32>
    %112 = vector.broadcast %10 : vector<2x4x1xf32> to vector<2x4x16xf32>
    %113 = vector.broadcast %111 : vector<1x1x16xf32> to vector<2x4x16xf32>
    %114 = arith.mulf %112, %113 : vector<2x4x16xf32>
    %115 = arith.addf %109, %114 : vector<2x4x16xf32>
    %116 = vector.extract_strided_slice %0 {offsets = [3, 0], sizes = [1, 16], strides = [1, 1]} : vector<4x16xf32> to vector<1x16xf32>
    %117 = vector.shape_cast %116 : vector<1x16xf32> to vector<1x1x16xf32>
    %118 = vector.broadcast %11 : vector<2x4x1xf32> to vector<2x4x16xf32>
    %119 = vector.broadcast %117 : vector<1x1x16xf32> to vector<2x4x16xf32>
    %120 = arith.mulf %118, %119 : vector<2x4x16xf32>
    %121 = arith.addf %115, %120 : vector<2x4x16xf32>
    %122 = vector.shape_cast %1 : vector<1x16xf32> to vector<1x1x16xf32>
    %123 = vector.broadcast %122 : vector<1x1x16xf32> to vector<2x4x16xf32>
    %124 = arith.addf %121, %123 : vector<2x4x16xf32>
    %cst_32 = arith.constant 2.000000e-01 : f32
    %125 = vector.broadcast %cst_32 : f32 to vector<2x4x16xf32>
    %126 = arith.mulf %125, %124 : vector<2x4x16xf32>
    %127 = arith.maximumf %124, %126 : vector<2x4x16xf32>
    %128 = tpu.concatenate %40, %69, %98, %127 in 2 : vector<2x4x16xf32>, vector<2x4x16xf32>, vector<2x4x16xf32>, vector<2x4x16xf32> -> vector<2x4x64xf32>
    %129 = tpu.iota {dimensions = array<i32: 1>} : vector<1x4x64xi32>
    %130 = tpu.iota {dimensions = array<i32: 2>} : vector<1x4x64xi32>
    %c0_i32 = arith.constant 0 : i32
    %131 = vector.broadcast %c0_i32 : i32 to vector<1x4x64xi32>
    %132 = arith.cmpi eq, %129, %131 : vector<1x4x64xi32>
    %c16_i32 = arith.constant 16 : i32
    %133 = vector.broadcast %c16_i32 : i32 to vector<1x4x64xi32>
    %134 = arith.cmpi slt, %130, %133 : vector<1x4x64xi32>
    %135 = arith.andi %132, %134 : vector<1x4x64xi1>
    %c3_i32 = arith.constant 3 : i32
    %136 = vector.broadcast %c3_i32 : i32 to vector<1x4x64xi32>
    %137 = arith.cmpi eq, %129, %136 : vector<1x4x64xi32>
    %c48_i32 = arith.constant 48 : i32
    %138 = vector.broadcast %c48_i32 : i32 to vector<1x4x64xi32>
    %139 = arith.cmpi sge, %130, %138 : vector<1x4x64xi32>
    %140 = arith.andi %137, %139 : vector<1x4x64xi1>
    %141 = arith.ori %135, %140 : vector<1x4x64xi1>
    %cst_33 = arith.constant 0.000000e+00 : f32
    %142 = vector.shape_cast %141 : vector<1x4x64xi1> to vector<1x4x64xi1>
    %143 = vector.broadcast %142 : vector<1x4x64xi1> to vector<2x4x64xi1>
    %144 = vector.broadcast %cst_33 : f32 to vector<2x4x64xf32>
    %145 = arith.select %143, %144, %128 : vector<2x4x64xi1>, vector<2x4x64xf32>
    %c0_34 = arith.constant 0 : index
    %c0_35 = arith.constant 0 : index
    %146 = vector.load %arg4[%c0_34, %c0_35] : memref<64x32xf32, #tpu.memory_space<vmem>>, vector<64x32xf32>
    %c0_36 = arith.constant 0 : index
    %c0_37 = arith.constant 0 : index
    %147 = vector.load %arg5[%c0_36, %c0_37] : memref<1x32xf32, #tpu.memory_space<vmem>>, vector<1x32xf32>
    %c0_38 = arith.constant 0 : index
    %c0_39 = arith.constant 0 : index
    %148 = vector.load %arg6[%c0_38, %c0_39] : memref<1x32xf32, #tpu.memory_space<vmem>>, vector<1x32xf32>
    %c0_40 = arith.constant 0 : index
    %c0_41 = arith.constant 0 : index
    %149 = vector.load %arg7[%c0_40, %c0_41] : memref<1x32xf32, #tpu.memory_space<vmem>>, vector<1x32xf32>
    %c0_42 = arith.constant 0 : index
    %c0_43 = arith.constant 0 : index
    %150 = vector.load %arg8[%c0_42, %c0_43] : memref<4x32xf32, #tpu.memory_space<vmem>>, vector<4x32xf32>
    %c0_44 = arith.constant 0 : index
    %c0_45 = arith.constant 0 : index
    %151 = vector.load %arg9[%c0_44, %c0_45] : memref<1x1xf32, #tpu.memory_space<vmem>>, vector<1x1xf32>
    %152 = vector.extract_strided_slice %145 {offsets = [0, 0, 0], sizes = [1, 4, 64], strides = [1, 1, 1]} : vector<2x4x64xf32> to vector<1x4x64xf32>
    %153 = vector.shape_cast %152 : vector<1x4x64xf32> to vector<4x64xf32>
    %cst_46 = arith.constant dense<0.000000e+00> : vector<4x32xf32>
    %154 = tpu.matmul %153, %146, %cst_46 {dimension_numbers = #tpu.dot_dimension_numbers<[1], [0], [0], [1], [0, 0, 1, 1], [], []>} : vector<4x64xf32>, vector<64x32xf32>, vector<4x32xf32> -> vector<4x32xf32>
    %155 = vector.broadcast %147 : vector<1x32xf32> to vector<4x32xf32>
    %156 = arith.addf %154, %155 : vector<4x32xf32>
    %157 = vector.broadcast %148 : vector<1x32xf32> to vector<4x32xf32>
    %158 = arith.mulf %156, %157 : vector<4x32xf32>
    %159 = vector.broadcast %149 : vector<1x32xf32> to vector<4x32xf32>
    %160 = arith.addf %158, %159 : vector<4x32xf32>
    %cst_47 = arith.constant 2.000000e-01 : f32
    %161 = vector.broadcast %cst_47 : f32 to vector<4x32xf32>
    %162 = arith.mulf %161, %160 : vector<4x32xf32>
    %163 = arith.maximumf %160, %162 : vector<4x32xf32>
    %164 = arith.mulf %163, %150 : vector<4x32xf32>
    %165 = vector.shape_cast %164 : vector<4x32xf32> to vector<1x4x32xf32>
    %cst_48 = arith.constant dense<0.000000e+00> : vector<1xf32>
    %166 = vector.multi_reduction <add>, %165, %cst_48 [1, 2] : vector<1x4x32xf32> to vector<1xf32>
    %167 = vector.shape_cast %166 : vector<1xf32> to vector<1x1x1xf32>
    %168 = vector.extract %167[0, 0, 0] : f32 from vector<1x1x1xf32>
    %169 = vector.broadcast %168 : f32 to vector<1x1xf32>
    %170 = arith.addf %169, %151 : vector<1x1xf32>
    %171 = vector.extract_strided_slice %145 {offsets = [1, 0, 0], sizes = [1, 4, 64], strides = [1, 1, 1]} : vector<2x4x64xf32> to vector<1x4x64xf32>
    %172 = vector.shape_cast %171 : vector<1x4x64xf32> to vector<4x64xf32>
    %cst_49 = arith.constant dense<0.000000e+00> : vector<4x32xf32>
    %173 = tpu.matmul %172, %146, %cst_49 {dimension_numbers = #tpu.dot_dimension_numbers<[1], [0], [0], [1], [0, 0, 1, 1], [], []>} : vector<4x64xf32>, vector<64x32xf32>, vector<4x32xf32> -> vector<4x32xf32>
    %174 = vector.broadcast %147 : vector<1x32xf32> to vector<4x32xf32>
    %175 = arith.addf %173, %174 : vector<4x32xf32>
    %176 = vector.broadcast %148 : vector<1x32xf32> to vector<4x32xf32>
    %177 = arith.mulf %175, %176 : vector<4x32xf32>
    %178 = vector.broadcast %149 : vector<1x32xf32> to vector<4x32xf32>
    %179 = arith.addf %177, %178 : vector<4x32xf32>
    %cst_50 = arith.constant 2.000000e-01 : f32
    %180 = vector.broadcast %cst_50 : f32 to vector<4x32xf32>
    %181 = arith.mulf %180, %179 : vector<4x32xf32>
    %182 = arith.maximumf %179, %181 : vector<4x32xf32>
    %183 = arith.mulf %182, %150 : vector<4x32xf32>
    %184 = vector.shape_cast %183 : vector<4x32xf32> to vector<1x4x32xf32>
    %cst_51 = arith.constant dense<0.000000e+00> : vector<1xf32>
    %185 = vector.multi_reduction <add>, %184, %cst_51 [1, 2] : vector<1x4x32xf32> to vector<1xf32>
    %186 = vector.shape_cast %185 : vector<1xf32> to vector<1x1x1xf32>
    %187 = vector.extract %186[0, 0, 0] : f32 from vector<1x1x1xf32>
    %188 = vector.broadcast %187 : f32 to vector<1x1xf32>
    %189 = arith.addf %188, %151 : vector<1x1xf32>
    %190 = tpu.concatenate %170, %189 in 1 : vector<1x1xf32>, vector<1x1xf32> -> vector<1x2xf32>
    %cst_52 = arith.constant 0.000000e+00 : f32
    %191 = vector.broadcast %cst_52 : f32 to vector<1x2xf32>
    %192 = arith.subf %191, %190 : vector<1x2xf32>
    %193 = math.exp %192 : vector<1x2xf32>
    %cst_53 = arith.constant 1.000000e+00 : f32
    %194 = vector.broadcast %cst_53 : f32 to vector<1x2xf32>
    %195 = arith.addf %194, %193 : vector<1x2xf32>
    %cst_54 = arith.constant 1.000000e+00 : f32
    %196 = vector.broadcast %cst_54 : f32 to vector<1x2xf32>
    %197 = arith.divf %196, %195 : vector<1x2xf32>
    %198 = vector.shape_cast %197 : vector<1x2xf32> to vector<1x1x2xf32>
    %c0_55 = arith.constant 0 : index
    %c0_56 = arith.constant 0 : index
    %c0_57 = arith.constant 0 : index
    %199 = vector.load %arg10[%c0_55, %c0_56, %c0_57] : memref<1x1x2xf32, #tpu.memory_space<vmem>>, vector<1x1x2xf32>
    tpu.vector_store %arg10[%c0_55, %c0_56, %c0_57], %198 {strides = array<i32>} : memref<1x1x2xf32, #tpu.memory_space<vmem>>, vector<1x1x2xf32>,
    return
  }
  func.func @transform_0(%arg0: i32) -> (i32, i32, i32) {
    %c0_i32 = arith.constant 0 : i32
    %c0_i32_0 = arith.constant 0 : i32
    %c0_i32_1 = arith.constant 0 : i32
    return %arg0, %c0_i32, %c0_i32_0 : i32, i32, i32
  }
  func.func @transform_1(%arg0: i32) -> (i32, i32) {
    %c0_i32 = arith.constant 0 : i32
    %c0_i32_0 = arith.constant 0 : i32
    %c0_i32_1 = arith.constant 0 : i32
    return %c0_i32, %c0_i32_0 : i32, i32
  }
  func.func @transform_2(%arg0: i32) -> (i32, i32) {
    %c0_i32 = arith.constant 0 : i32
    %c0_i32_0 = arith.constant 0 : i32
    %c0_i32_1 = arith.constant 0 : i32
    return %c0_i32, %c0_i32_0 : i32, i32
  }
  func.func @transform_3(%arg0: i32) -> (i32, i32) {
    %c0_i32 = arith.constant 0 : i32
    %c0_i32_0 = arith.constant 0 : i32
    %c0_i32_1 = arith.constant 0 : i32
    return %c0_i32, %c0_i32_0 : i32, i32
  }
  func.func @transform_4(%arg0: i32) -> (i32, i32) {
    %c0_i32 = arith.constant 0 : i32
    %c0_i32_0 = arith.constant 0 : i32
    %c0_i32_1 = arith.constant 0 : i32
    return %c0_i32, %c0_i32_0 : i32, i32
  }
  func.func @transform_5(%arg0: i32) -> (i32, i32) {
    %c0_i32 = arith.constant 0 : i32
    %c0_i32_0 = arith.constant 0 : i32
    %c0_i32_1 = arith.constant 0 : i32
    return %c0_i32, %c0_i32_0 : i32, i32
  }
  func.func @transform_6(%arg0: i32) -> (i32, i32) {
    %c0_i32 = arith.constant 0 : i32
    %c0_i32_0 = arith.constant 0 : i32
    %c0_i32_1 = arith.constant 0 : i32
    return %c0_i32, %c0_i32_0 : i32, i32
  }
  func.func @transform_7(%arg0: i32) -> (i32, i32) {
    %c0_i32 = arith.constant 0 : i32
    %c0_i32_0 = arith.constant 0 : i32
    %c0_i32_1 = arith.constant 0 : i32
    return %c0_i32, %c0_i32_0 : i32, i32
  }
  func.func @transform_8(%arg0: i32) -> (i32, i32) {
    %c0_i32 = arith.constant 0 : i32
    %c0_i32_0 = arith.constant 0 : i32
    %c0_i32_1 = arith.constant 0 : i32
    return %c0_i32, %c0_i32_0 : i32, i32
  }
  func.func @transform_9(%arg0: i32) -> (i32, i32, i32) {
    %c0_i32 = arith.constant 0 : i32
    %c0_i32_0 = arith.constant 0 : i32
    %c0_i32_1 = arith.constant 0 : i32
    return %arg0, %c0_i32, %c0_i32_0 : i32, i32, i32
  }
}

</mosaic_0001>

<bundles_post_ra>
// kernel: squeeze.5
= control target key start
LH: loop header
LB: loop body
LE: loop exit
PB: predicated region body
PF: predicated region fallthrough
CT: control target
= control target key end

     0   :  { %s259_s8 = smov 116   ;;  %s260_s9 = smov 120   ;;  %vm8_vm0 = vcmask 31744   ;;  %s430_s0 = inlined_call_operand.vmem [shape: f32[128], index: 0, kind: input, shape index: {}]   ;;  %s431_s1 = inlined_call_operand.vmem [shape: f32[32,4], index: 1, kind: output, shape index: {}]  }
   0x1   :  { %v5_v0 = vld [vmem:[%s430_s0] sm:$0x1]  ;;  %s258_s0 = smov 124   ;;  %s261_s10 = smov 112  }
   0x2   :  { %6 = vst [vmem:[#allocation0] sm:$0x1] %v5_v0  ;;  %s262_s11 = smov 108   ;;  %s263_s12 = smov 104  }
   0x3   :  { %s264_s13 = smov 100   ;;  %s265_s14 = smov 96  }
   0x4   :  { %s266_s15 = smov 92   ;;  %s267_s16 = smov 88  }
   0x5   :  { %s268_s17 = smov 84   ;;  %s269_s18 = smov 80  }
   0x6   :  { %s270_s19 = smov 76   ;;  %s271_s20 = smov 72  }
   0x7   :  { %s272_s21 = smov 68   ;;  %s273_s22 = smov 64  }
   0x8   :  { %s274_s23 = smov 60   ;;  %s275_s24 = smov 56  }
   0x9   :  { %v10_v1 = vld [vmem:[#allocation0] sm:$0x1]   ;;  %s276_s25 = smov 52   ;;  %s277_s26 = smov 48  }
   0xa   :  { %v22_v2 = vld [vmem:[#allocation0] sm:$0x1]   ;;  %11 = vrot.lane.b32.xlu0 %v10_v1, %s258_s0  ;;  %s278_s27 = smov 44   ;;  %s279_s28 = smov 40  }
   0xb   :  { %23 = vrot.lane.b32.xlu1 %v22_v2, %s259_s8  ;;  %v16_v3 = vld [vmem:[#allocation0] sm:$0x1]   ;;  %s280_s29 = smov 36   ;;  %s281_s30 = smov 32  }
   0xc   :  { %v28_v4 = vld [vmem:[#allocation0] sm:$0x1]   ;;  %s282_s4 = smov 28   ;;  %s283_s5 = smov 24  }
   0xd   :  { %v34_v5 = vld [vmem:[#allocation0] sm:$0x1]   ;;  %s284_s6 = smov 20   ;;  %s285_s7 = smov 16  }
   0xe   :  { %17 = vrot.lane.b32.xlu0 %v16_v3, %s260_s9  ;;  %v40_v6 = vld [vmem:[#allocation0] sm:$0x1]   ;;  %s286_s0 = smov 12   ;;  %s287_s8 = smov 8  }
   0xf   :  { %29 = vrot.lane.b32.xlu1 %v28_v4, %s261_s10  ;;  %v46_v7 = vld [vmem:[#allocation0] sm:$0x1]   ;;  %s288_s9 = smov 4  }
  0x10   :  { %v52_v8 = vld [vmem:[#allocation0] sm:$0x1]  }
  0x11   :  { %v58_v9 = vld [vmem:[#allocation0] sm:$0x1]  }
  0x12   :  { %35 = vrot.lane.b32.xlu0 %v34_v5, %s262_s11  ;;  %v64_v10 = vld [vmem:[#allocation0] sm:$0x1]  }
  0x13   :  { %41 = vrot.lane.b32.xlu1 %v40_v6, %s263_s12  ;;  %v70_v11 = vld [vmem:[#allocation0] sm:$0x1]  }
  0x14   :  { %v76_v12 = vld [vmem:[#allocation0] sm:$0x1]  }
  0x15   :  { %v82_v13 = vld [vmem:[#allocation0] sm:$0x1]  }
  0x16   :  { %47 = vrot.lane.b32.xlu0 %v46_v7, %s264_s13  ;;  %v88_v14 = vld [vmem:[#allocation0] sm:$0x1]  }
  0x17   :  { %53 = vrot.lane.b32.xlu1 %v52_v8, %s265_s14  ;;  %v94_v15 = vld [vmem:[#allocation0] sm:$0x1]  }
  0x18   :  { %v100_v16 = vld [vmem:[#allocation0] sm:$0x1]  }
  0x19   :  { %v106_v17 = vld [vmem:[#allocation0] sm:$0x1]  }
  0x1a   :  { %59 = vrot.lane.b32.xlu0 %v58_v9, %s266_s15  ;;  %v112_v18 = vld [vmem:[#allocation0] sm:$0x1]  }
  0x1b   :  { %65 = vrot.lane.b32.xlu1 %v64_v10, %s267_s16  ;;  %v118_v19 = vld [vmem:[#allocation0] sm:$0x1]  }
  0x1c   :  { %v124_v20 = vld [vmem:[#allocation0] sm:$0x1]  }
  0x1d   :  { %v130_v21 = vld [vmem:[#allocation0] sm:$0x1]  }
  0x1e   :  { %71 = vrot.lane.b32.xlu0 %v70_v11, %s268_s17  ;;  %v136_v22 = vld [vmem:[#allocation0] sm:$0x1]  }
  0x1f   :  { %77 = vrot.lane.b32.xlu1 %v76_v12, %s269_s18  ;;  %v142_v23 = vld [vmem:[#allocation0] sm:$0x1]  }
  0x20   :  { %v148_v24 = vld [vmem:[#allocation0] sm:$0x1]  }
  0x21   :  { %v154_v25 = vld [vmem:[#allocation0] sm:$0x1]  }
  0x22   :  { %83 = vrot.lane.b32.xlu0 %v82_v13, %s270_s19  ;;  %v160_v26 = vld [vmem:[#allocation0] sm:$0x1]  }
  0x23   :  { %89 = vrot.lane.b32.xlu1 %v88_v14, %s271_s20  ;;  %v7_v27 = vld [vmem:[#allocation0] sm:$0x1]  }
  0x24   :  { %9 = vst.msk [vmem:[%s431_s1] sm:$0x1] %vm8_vm0, %v7_v27   ;;  %v166_v28 = vld [vmem:[#allocation0] sm:$0x1]  }
  0x25   :  { %v172_v29 = vld [vmem:[#allocation0] sm:$0x1]  }
  0x26   :  { %95 = vrot.lane.b32.xlu0 %v94_v15, %s272_s21  ;;  %v178_v30 = vld [vmem:[#allocation0] sm:$0x1]  }
  0x27   :  { %101 = vrot.lane.b32.xlu1 %v100_v16, %s273_s22  ;;  %v184_v31 = vld [vmem:[#allocation0] sm:$0x1]  }
  0x28   :  { %v190_v32 = vld [vmem:[#allocation0] sm:$0x1]  }
  0x2a   :  { %107 = vrot.lane.b32.xlu0 %v106_v17, %s274_s23 }
  0x2b   :  { %113 = vrot.lane.b32.xlu1 %v112_v18, %s275_s24 }
  0x2e   :  { %119 = vrot.lane.b32.xlu0 %v118_v19, %s276_s25 }
  0x2f   :  { %125 = vrot.lane.b32.xlu1 %v124_v20, %s277_s26 }
  0x32   :  { %131 = vrot.lane.b32.xlu0 %v130_v21, %s278_s27 }
  0x33   :  { %137 = vrot.lane.b32.xlu1 %v136_v22, %s279_s28 }
  0x36   :  { %143 = vrot.lane.b32.xlu0 %v142_v23, %s280_s29 }
  0x37   :  { %149 = vrot.lane.b32.xlu1 %v148_v24, %s281_s30 }
  0x3a   :  { %155 = vrot.lane.b32.xlu0 %v154_v25, %s282_s4 }
  0x3b   :  { %161 = vrot.lane.b32.xlu1 %v160_v26, %s283_s5 }
  0x3e   :  { %167 = vrot.lane.b32.xlu0 %v166_v28, %s284_s6 }
  0x3f   :  { %173 = vrot.lane.b32.xlu1 %v172_v29, %s285_s7 }
  0x42   :  { %179 = vrot.lane.b32.xlu0 %v178_v30, %s286_s0 }
  0x43   :  { %185 = vrot.lane.b32.xlu1 %v184_v31, %s287_s8 }
  0x46   :  { %191 = vrot.lane.b32.xlu0 %v190_v32, %s288_s9 }
  0x7c   :  { %v12_v33 = vpop.permute.xlu0 %11  }
  0x7d   :  { %v24_v34 = vpop.permute.xlu1 %23   ;;  %196 = vst.msk [vmem:[%s431_s1 + $0x1] sm:$0x1] %vm8_vm0, %v12_v33  }
  0x7e   :  { %198 = vst.msk [vmem:[%s431_s1 + $0x3] sm:$0x1] %vm8_vm0, %v24_v34  }
  0x80   :  { %v18_v35 = vpop.permute.xlu0 %17  }
  0x81   :  { %v30_v36 = vpop.permute.xlu1 %29   ;;  %197 = vst.msk [vmem:[%s431_s1 + $0x2] sm:$0x1] %vm8_vm0, %v18_v35  }
  0x82   :  { %199 = vst.msk [vmem:[%s431_s1 + $0x4] sm:$0x1] %vm8_vm0, %v30_v36  }
  0x84   :  { %v36_v37 = vpop.permute.xlu0 %35  }
  0x85   :  { %v42_v38 = vpop.permute.xlu1 %41   ;;  %200 = vst.msk [vmem:[%s431_s1 + $0x5] sm:$0x1] %vm8_vm0, %v36_v37  }
  0x86   :  { %201 = vst.msk [vmem:[%s431_s1 + $0x6] sm:$0x1] %vm8_vm0, %v42_v38  }
  0x88   :  { %v48_v39 = vpop.permute.xlu0 %47  }
  0x89   :  { %v54_v40 = vpop.permute.xlu1 %53   ;;  %202 = vst.msk [vmem:[%s431_s1 + $0x7] sm:$0x1] %vm8_vm0, %v48_v39  }
  0x8a   :  { %203 = vst.msk [vmem:[%s431_s1 + $0x8] sm:$0x1] %vm8_vm0, %v54_v40  }
  0x8c   :  { %v60_v41 = vpop.permute.xlu0 %59  }
  0x8d   :  { %v66_v42 = vpop.permute.xlu1 %65   ;;  %204 = vst.msk [vmem:[%s431_s1 + $0x9] sm:$0x1] %vm8_vm0, %v60_v41  }
  0x8e   :  { %205 = vst.msk [vmem:[%s431_s1 + $0xa] sm:$0x1] %vm8_vm0, %v66_v42  }
  0x90   :  { %v72_v43 = vpop.permute.xlu0 %71  }
  0x91   :  { %v78_v44 = vpop.permute.xlu1 %77   ;;  %206 = vst.msk [vmem:[%s431_s1 + $0xb] sm:$0x1] %vm8_vm0, %v72_v43  }
  0x92   :  { %207 = vst.msk [vmem:[%s431_s1 + $0xc] sm:$0x1] %vm8_vm0, %v78_v44  }
  0x94   :  { %v84_v45 = vpop.permute.xlu0 %83  }
  0x95   :  { %v90_v46 = vpop.permute.xlu1 %89   ;;  %208 = vst.msk [vmem:[%s431_s1 + $0xd] sm:$0x1] %vm8_vm0, %v84_v45  }
  0x96   :  { %209 = vst.msk [vmem:[%s431_s1 + $0xe] sm:$0x1] %vm8_vm0, %v90_v46  }
  0x98   :  { %v96_v47 = vpop.permute.xlu0 %95  }
  0x99   :  { %v102_v48 = vpop.permute.xlu1 %101   ;;  %210 = vst.msk [vmem:[%s431_s1 + $0xf] sm:$0x1] %vm8_vm0, %v96_v47  }
  0x9a   :  { %211 = vst.msk [vmem:[%s431_s1 + $0x10] sm:$0x1] %vm8_vm0, %v102_v48  }
  0x9c   :  { %v108_v49 = vpop.permute.xlu0 %107  }
  0x9d   :  { %v114_v50 = vpop.permute.xlu1 %113   ;;  %212 = vst.msk [vmem:[%s431_s1 + $0x11] sm:$0x1] %vm8_vm0, %v108_v49  }
  0x9e   :  { %213 = vst.msk [vmem:[%s431_s1 + $0x12] sm:$0x1] %vm8_vm0, %v114_v50  }
  0xa0   :  { %v120_v51 = vpop.permute.xlu0 %119  }
  0xa1   :  { %v126_v52 = vpop.permute.xlu1 %125   ;;  %214 = vst.msk [vmem:[%s431_s1 + $0x13] sm:$0x1] %vm8_vm0, %v120_v51  }
  0xa2   :  { %215 = vst.msk [vmem:[%s431_s1 + $0x14] sm:$0x1] %vm8_vm0, %v126_v52  }
  0xa4   :  { %v132_v53 = vpop.permute.xlu0 %131  }
  0xa5   :  { %v138_v54 = vpop.permute.xlu1 %137   ;;  %216 = vst.msk [vmem:[%s431_s1 + $0x15] sm:$0x1] %vm8_vm0, %v132_v53  }
  0xa6   :  { %217 = vst.msk [vmem:[%s431_s1 + $0x16] sm:$0x1] %vm8_vm0, %v138_v54  }
  0xa8   :  { %v144_v55 = vpop.permute.xlu0 %143  }
  0xa9   :  { %v150_v56 = vpop.permute.xlu1 %149   ;;  %218 = vst.msk [vmem:[%s431_s1 + $0x17] sm:$0x1] %vm8_vm0, %v144_v55  }
  0xaa   :  { %219 = vst.msk [vmem:[%s431_s1 + $0x18] sm:$0x1] %vm8_vm0, %v150_v56  }
  0xac   :  { %v156_v57 = vpop.permute.xlu0 %155  }
  0xad   :  { %v162_v58 = vpop.permute.xlu1 %161   ;;  %220 = vst.msk [vmem:[%s431_s1 + $0x19] sm:$0x1] %vm8_vm0, %v156_v57  }
  0xae   :  { %221 = vst.msk [vmem:[%s431_s1 + $0x1a] sm:$0x1] %vm8_vm0, %v162_v58  }
  0xb0   :  { %v168_v59 = vpop.permute.xlu0 %167  }
  0xb1   :  { %v174_v60 = vpop.permute.xlu1 %173   ;;  %222 = vst.msk [vmem:[%s431_s1 + $0x1b] sm:$0x1] %vm8_vm0, %v168_v59  }
  0xb2   :  { %223 = vst.msk [vmem:[%s431_s1 + $0x1c] sm:$0x1] %vm8_vm0, %v174_v60  }
  0xb4   :  { %v180_v61 = vpop.permute.xlu0 %179  }
  0xb5   :  { %v186_v62 = vpop.permute.xlu1 %185   ;;  %224 = vst.msk [vmem:[%s431_s1 + $0x1d] sm:$0x1] %vm8_vm0, %v180_v61  }
  0xb6   :  { %225 = vst.msk [vmem:[%s431_s1 + $0x1e] sm:$0x1] %vm8_vm0, %v186_v62  }
  0xb8   :  { %v192_v63 = vpop.permute.xlu0 %191  }
  0xb9   :  { %226 = vst.msk [vmem:[%s431_s1 + $0x1f] sm:$0x1] %vm8_vm0, %v192_v63  }

// kernel: discriminator_forward.3
= control target key start
LH: loop header
LB: loop body
LE: loop exit
PB: predicated region body
PF: predicated region fallthrough
CT: control target
= control target key end

     0   :  { %s883_s0 = inlined_call_operand.vmem [shape: f32[2,6,4], index: 0, kind: input, shape index: {}]   ;;  %s884_s1 = inlined_call_operand.vmem [shape: f32[4,16], index: 1, kind: input, shape index: {}]   ;;  %s885_s2 = inlined_call_operand.vmem [shape: f32[1,16], index: 2, kind: input, shape index: {}]   ;;  %s886_s3 = inlined_call_operand.vmem [shape: f32[64,32], index: 3, kind: input, shape index: {}]   ;;  %s887_s4 = inlined_call_operand.vmem [shape: f32[1,32], index: 4, kind: input, shape index: {}]   ;;  %s888_s5 = inlined_call_operand.vmem [shape: f32[1,32], index: 5, kind: input, shape index: {}]   ;;  %s889_s6 = inlined_call_operand.vmem [shape: f32[1,32], index: 6, kind: input, shape index: {}]   ;;  %s890_s7 = inlined_call_operand.vmem [shape: f32[4,32], index: 7, kind: input, shape index: {}]   ;;  %s891_s8 = inlined_call_operand.<no memory space> [shape: f32[1,1], index: 8, kind: input, shape index: {}]   ;;  %s892_s9 = inlined_call_operand.hbm [shape: f32[1,1,2], index: 9, kind: output, shape index: {}]  }
   0x1   :  { %v14_v0 = vstv %s891_s8 }
   0x2   :  { %15 = vst [vmem:[#allocation2] sm:$0x1] %v14_v0 }
   0x3   :  { %v37_v1 = vld [vmem:[%s883_s0] sm:$0xf]  ;;  %v641_v2 = vmov 3   ;;  %v642_v3 = vmov 2   ;;  %v38_v4 = vld [vmem:[%s883_s0 + $0x8] sm:$0xf] }
   0x4   :  { %602 = vset.pattern.permute.xlu1 %v641_v2  ;;  %601 = vset.pattern.permute.xlu0 %v642_v3 }
   0x5   :  { %92 = vperm.xlu1 %602, %v37_v1   ;;  %76 = vperm.xlu0 %601, %v37_v1  }
   0x6   :  { %16 = vsyncpa [#allocation4], 0  ;;  %v40_v5 = vld [vmem:[%s883_s0 + $0x9] sm:$0xf]  ;;  %v643_v6 = vmov 0   ;;  %v644_v7 = vmov 1   ;;  %v53_v11 = vlaneseq }
   0x7   :  { %v39_v8 = vld [vmem:[%s883_s0 + $0x1] sm:$0xf]  ;;  %v42_v9 = vld [vmem:[%s883_s0 + $0xa] sm:$0xf]  ;;  %v762_v38 = vld [vmem:[%s885_s2] ss:$0 sm:$0xff] }
   0x8   :  { %v41_v10 = vld [vmem:[%s883_s0 + $0x2] sm:$0xf]  ;;  %v724_v12 = vshrl.u32 %v53_v11, 7  ;;  %v645_v52 = vmov 0.0   ;;  %s646_s2 = smov 16   ;;  %v286_v63 = vld [vmem:[%s886_s3 + $0x38] sm:$0xff] }
   0x9   :  { %96 = vperm.xlu1 %602, %v38_v4   ;;  %80 = vperm.xlu0 %601, %v38_v4   ;;  %v35_v14 = vld [vmem:[%s884_s1] sm:$0xf]  ;;  %v285_v0 = vld [vmem:[%s886_s3 + $0x30] sm:$0xff]  ;;  %s647_s16 = smov 32   ;;  %vm648_vm0 = vmmov 0   ;;  %vm258_vm7 = vcmask 261120  }
   0xa   :  { %v101_v13 = vsub.s32 3, %v724_v12  ;;  %v85_v15 = vsub.s32 2, %v724_v12  ;;  %v69_v18 = vsub.s32 1, %v724_v12  ;;  %v55_v20 = vsub.s32 0, %v724_v12  ;;  %548 = vmatprep.subr.mxu0 %v645_v52  ;;  %567 = vmatprep.subr.mxu1 %v645_v52 }
   0xb   :  { %549 = vmatpush3.msra.mxu0 %v286_v63  ;;  %568 = vmatpush3.msra.mxu1 %v286_v63  ;;  %vm268_vm1 = vcmp.eq.s32.totalorder %v724_v12, 0  ;;  %vm271_vm3 = vcmp.eq.s32.totalorder %v724_v12, 3  ;;  %vm255_vm8 = vcmask 130048   ;;  %vm261_vm9 = vcmask 392192  }
   0xc   :  { %v731_v16 = vrot.slane %v35_v14, %v101_v13  ;;  %v733_v17 = vrot.slane %v35_v14, %v85_v15  ;;  %v743_v24 = vrot.slane %v35_v14, %v69_v18  ;;  %v747_v25 = vrot.slane %v35_v14, %v55_v20  ;;  %550 = vmatprep.subr.mxu0 %v645_v52 }
   0xd   :  { %603 = vset.pattern.permute.xlu1 %v643_v6  ;;  %605 = vset.pattern.permute.xlu0 %v644_v7  ;;  %vm298_vm11 = vcmask 523264   ;;  %vm389_vm12 = vcmask 257024   ;;  %vm500_vm13 = vcmask 7168   ;;  %vm508_vm14 = vcmask 8192  }
   0xe   :  { %132 = vperm.xlu1 %603, %v40_v5   ;;  %144 = vperm.xlu0 %605, %v40_v5  }
   0xf   :  { %551 = vmatpush3.msra.mxu0 %v285_v0  ;;  %569 = vmatprep.subr.mxu1 %v645_v52 }
  0x10   :  { %552 = vmatprep.subr.mxu0 %v645_v52  ;;  %570 = vmatpush3.msra.mxu1 %v285_v0 }
  0x11   :  { %571 = vmatprep.subr.mxu1 %v645_v52  ;;  %564 = vmatprep.mubr.msk.f32.mxu0 %vm648_vm0, %v645_v52 }
  0x12   :  { %604 = vset.pattern.permute.xlu1 %v644_v7  ;;  %607 = vset.pattern.permute.xlu0 %v641_v2 }
  0x13   :  { %140 = vperm.xlu1 %604, %v39_v8   ;;  %176 = vperm.xlu0 %607, %v39_v8  }
  0x14   :  { %583 = vmatprep.mubr.msk.f32.mxu1 %vm648_vm0, %v645_v52 }
  0x17   :  { %606 = vset.pattern.permute.xlu1 %v642_v3  ;;  %608 = vset.pattern.permute.xlu0 %v643_v6 }
  0x18   :  { %164 = vperm.xlu1 %606, %v39_v8   ;;  %127 = vperm.xlu0 %608, %v39_v8  }
  0x1c   :  { %168 = vperm.xlu1 %606, %v40_v5   ;;  %206 = vperm.xlu0 %608, %v42_v9  }
  0x20   :  { %609 = vset.pattern.permute.xlu1 %v641_v2  ;;  %45 = vperm.xlu0 %608, %v37_v1  }
  0x21   :  { %180 = vperm.xlu1 %609, %v40_v5  }
  0x24   :  { %613 = vset.pattern.permute.xlu0 %v644_v7 }
  0x25   :  { %610 = vset.pattern.permute.xlu1 %v643_v6  ;;  %60 = vperm.xlu0 %613, %v37_v1  }
  0x26   :  { %201 = vperm.xlu1 %610, %v41_v10  }
  0x2a   :  { %611 = vset.pattern.permute.xlu1 %v644_v7 }
  0x2b   :  { %214 = vperm.xlu1 %611, %v41_v10  }
  0x2f   :  { %218 = vperm.xlu1 %611, %v42_v9   ;;  %v283_v9 = vld [vmem:[%s886_s3 + $0x20] sm:$0xff] }
  0x33   :  { %612 = vset.pattern.permute.xlu1 %v643_v6  ;;  %v284_v6 = vld [vmem:[%s886_s3 + $0x28] sm:$0xff] }
  0x34   :  { %50 = vperm.xlu1 %612, %v38_v4   ;;  %553 = vmatpush3.msra.mxu0 %v284_v6 }
  0x35   :  { %554 = vmatprep.subr.mxu0 %v645_v52  ;;  %572 = vmatpush3.msra.mxu1 %v284_v6 }
  0x36   :  { %555 = vmatpush3.msra.mxu0 %v283_v9  ;;  %573 = vmatprep.subr.mxu1 %v645_v52 }
  0x37   :  { %556 = vmatprep.subr.mxu0 %v645_v52  ;;  %574 = vmatpush3.msra.mxu1 %v283_v9 }
  0x38   :  { %614 = vset.pattern.permute.xlu1 %v644_v7  ;;  %575 = vmatprep.subr.mxu1 %v645_v52 }
  0x39   :  { %64 = vperm.xlu1 %614, %v38_v4  }
  0x80   :  { %v93_v19 = vpop.permute.xlu1 %92  ;;  %v77_v21 = vpop.permute.xlu0 %76 }
  0x81   :  { %v738_v22 = vmul.f32 %v731_v16, %v93_v19  ;;  %v741_v23 = vmul.f32 %v733_v17, %v77_v21  ;;  %v121_v42 = vmul.f32 %v93_v19, %v743_v24  ;;  %v119_v43 = vmul.f32 %v77_v21, %v747_v25  ;;  %v282_v19 = vld [vmem:[%s886_s3 + $0x18] sm:$0xff] }
  0x82   :  { %557 = vmatpush3.msra.mxu0 %v282_v19  ;;  %576 = vmatpush3.msra.mxu1 %v282_v19 }
  0x83   :  { %v123_v48 = vadd.f32 %v121_v42, %v119_v43  ;;  %558 = vmatprep.subr.mxu0 %v645_v52  ;;  %577 = vmatprep.subr.mxu1 %v645_v52 }
  0x84   :  { %v97_v26 = vpop.permute.xlu1 %96  ;;  %v81_v27 = vpop.permute.xlu0 %80 }
  0x85   :  { %v750_v28 = vmul.f32 %v731_v16, %v97_v26  ;;  %v753_v29 = vmul.f32 %v733_v17, %v81_v27  ;;  %v122_v30 = vmul.f32 %v97_v26, %v743_v24  ;;  %v120_v31 = vmul.f32 %v81_v27, %v747_v25 }
  0x87   :  { %v124_v34 = vadd.f32 %v122_v30, %v120_v31  ;;  %v281_v31 = vld [vmem:[%s886_s3 + $0x10] sm:$0xff] }
  0x88   :  { %559 = vmatpush3.msra.mxu0 %v281_v31  ;;  %578 = vmatpush3.msra.mxu1 %v281_v31 }
  0x89   :  { %v133_v32 = vpop.permute.xlu1 %132  ;;  %v145_v33 = vpop.permute.xlu0 %144  ;;  %560 = vmatprep.subr.mxu0 %v645_v52  ;;  %579 = vmatprep.subr.mxu1 %v645_v52 }
  0x8a   :  { %v136_v35 = vmul.f32 %v133_v32, %v733_v17  ;;  %v148_v36 = vmul.f32 %v145_v33, %v731_v16  ;;  %v158_v59 = vmul.f32 %v133_v32, %v747_v25  ;;  %v160_v60 = vmul.f32 %v145_v33, %v743_v24 }
  0x8c   :  { %v138_v37 = vadd.f32 %v136_v35, %v124_v34  ;;  %v162_v7 = vadd.f32 %v160_v60, %v158_v59 }
  0x8e   :  { %v150_v39 = vadd.f32 %v148_v36, %v138_v37  ;;  %v141_v40 = vpop.permute.xlu1 %140  ;;  %v764_v41 = vpop.permute.xlu0 %176 }
  0x8f   :  { %v159_v49 = vmul.f32 %v141_v40, %v743_v24  ;;  %v147_v53 = vmul.f32 %v141_v40, %v731_v16  ;;  %v183_v55 = vmul.f32 %v764_v41, %v731_v16  ;;  %v195_v32 = vmul.f32 %v764_v41, %v743_v24 }
  0x90   :  { %v152_v44 = vadd.f32 %v762_v38, %v150_v39  ;;  %v280_v39 = vld [vmem:[%s886_s3 + $0x8] sm:$0xff] }
  0x91   :  { %561 = vmatpush3.msra.mxu0 %v280_v39  ;;  %580 = vmatpush3.msra.mxu1 %v280_v39  ;;  %v528_v39 = vld [vmem:[%s889_s6] ss:$0 sm:$0xff] }
  0x92   :  { %v154_v45 = vmul.f32 0.2, %v152_v44  ;;  %562 = vmatprep.subr.mxu0 %v645_v52  ;;  %581 = vmatprep.subr.mxu1 %v645_v52 }
  0x93   :  { %v165_v46 = vpop.permute.xlu1 %164  ;;  %v128_v47 = vpop.permute.xlu0 %127 }
  0x94   :  { %v135_v50 = vmul.f32 %v128_v47, %v733_v17  ;;  %v157_v51 = vmul.f32 %v128_v47, %v747_v25  ;;  %v156_v54 = vmax.f32 %v152_v44, %v154_v45  ;;  %v171_v56 = vmul.f32 %v165_v46, %v733_v17 }
  0x95   :  { %v193_v34 = vmul.f32 %v165_v46, %v747_v25 }
  0x96   :  { %v137_v57 = vadd.f32 %v135_v50, %v123_v48  ;;  %v161_v58 = vadd.f32 %v159_v49, %v157_v51  ;;  %235 = vrot.lane.b32.xlu0 %v156_v54, %s646_s2  ;;  %v279_v49 = vld [vmem:[%s886_s3] sm:$0xff]  ;;  %s649_s3 = smov 48  }
  0x97   :  { %v169_v61 = vpop.permute.xlu1 %168  ;;  %v781_v62 = vpop.permute.xlu0 %206  ;;  %v197_v46 = vadd.f32 %v195_v32, %v193_v34  ;;  %563 = vmatpush3.msra.mxu0 %v279_v49  ;;  %582 = vmatpush3.msra.mxu1 %v279_v49  ;;  %v525_v34 = vld [vmem:[%s887_s4] ss:$0 sm:$0xff] }
  0x98   :  { %v149_v1 = vadd.f32 %v147_v53, %v137_v57  ;;  %v173_v2 = vadd.f32 %v171_v56, %v161_v58  ;;  %v172_v3 = vmul.f32 %v169_v61, %v733_v17  ;;  %v194_v45 = vmul.f32 %v169_v61, %v747_v25 }
  0x99   :  { %v210_v50 = vmul.f32 %v781_v62, %v733_v17 }
  0x9a   :  { %v185_v4 = vadd.f32 %v183_v55, %v173_v2  ;;  %v151_v5 = vadd.f32 %v762_v38, %v149_v1  ;;  %v174_v15 = vadd.f32 %v172_v3, %v162_v7 }
  0x9b   :  { %v46_v8 = vpop.permute.xlu0 %45 }
  0x9c   :  { %v181_v10 = vpop.permute.xlu1 %180  ;;  %v153_v13 = vmul.f32 0.2, %v151_v5  ;;  %v187_v14 = vadd.f32 %v762_v38, %v185_v4  ;;  %v57_v30 = vmul.f32 %v747_v25, %v46_v8  ;;  %v267_v8 = vand.u32 127, %v53_v11 }
  0x9d   :  { %v184_v18 = vmul.f32 %v181_v10, %v731_v16  ;;  %v196_v40 = vmul.f32 %v181_v10, %v743_v24 }
  0x9e   :  { %v155_v21 = vmax.f32 %v151_v5, %v153_v13  ;;  %v189_v26 = vmul.f32 0.2, %v187_v14  ;;  %vm269_vm2 = vcmp.lt.s32.totalorder %v267_v8, 16  ;;  %vm272_vm4 = vcmp.ge.s32.totalorder %v267_v8, 48 }
  0x9f   :  { %v186_v27 = vadd.f32 %v184_v18, %v174_v15  ;;  %v198_v51 = vadd.f32 %v196_v40, %v194_v45  ;;  %vm854_vm5 = vmand %vm268_vm1, %vm269_vm2 }
  0xa0   :  { %v61_v33 = vpop.permute.xlu0 %60  ;;  %233 = vrot.lane.b32.xlu1 %v155_v21, %s646_s2  ;;  %v191_v41 = vmax.f32 %v187_v14, %v189_v26  ;;  %vm858_vm6 = vmand %vm271_vm3, %vm272_vm4  ;;  %s651_s2 = smov [#allocation3]  }
  0xa1   :  { %v188_v35 = vadd.f32 %v762_v38, %v186_v27  ;;  %v71_v36 = vmul.f32 %v743_v24, %v61_v33  ;;  %v202_v37 = vpop.permute.xlu1 %201  ;;  %v212_v59 = vadd.f32 %v210_v50, %v198_v51  ;;  %vm274_vm10 = vmor %vm854_vm5, %vm858_vm6  ;;  %s516_s24 = sshll.u32 %s651_s2, 4  ;;  %s517_s24 = int_to_ptr.vmem [resolvable:$true] %s516_s24 }
  0xa2   :  { %v209_v43 = vmul.f32 %v202_v37, %v733_v17  ;;  %s619_s25 = scalar_lea.vmem %s517_s24, 16  ;;  %s623_s26 = scalar_lea.vmem %s517_s24, 32 }
  0xa3   :  { %v73_v42 = vadd.f32 %v71_v36, %v57_v30  ;;  %v190_v44 = vmul.f32 0.2, %v188_v35  ;;  %p620_p0 = scmp.ne.s32.totalorder %s517_s24, %s619_s25  ;;  %p624_p1 = scmp.lt.s32.totalorder %s517_s24, %s517_s24 }
  0xa4   :  { %241 = vrot.lane.b32.xlu1 %v191_v41, %s647_s16  ;;  %p625_p2 = scmp.lt.s32.totalorder %s623_s26, %s619_s25 }
  0xa5   :  { %v89_v47 = vadd.f32 %v741_v23, %v73_v42  ;;  %v192_v48 = vmax.f32 %v188_v35, %v190_v44  ;;  %v211_v23 = vadd.f32 %v209_v43, %v197_v46  ;;  %v527_v35 = vld [vmem:[%s888_s5] ss:$0 sm:$0xff] }
  0xa6   :  { %v215_v53 = vpop.permute.xlu1 %214  ;;  %p626_p3 = por %p625_p2, %p624_p1 }
  0xa7   :  { %v105_v54 = vadd.f32 %v738_v22, %v89_v47  ;;  %v221_v55 = vmul.f32 %v215_v53, %v731_v16  ;;  %243 = vrot.lane.b32.xlu0 %v192_v48, %s647_s16  ;;  %v290_v48 = vld [vmem:[%s890_s7] sm:$0xf]  ;;  %s650_s7 = smov 1  }
  0xa8   :  { %p627_p4 = pnand %p626_p3, %p620_p0 }
  0xa9   :  { %v223_v56 = vadd.f32 %v221_v55, %v211_v23  ;;  %v113_v17 = vadd.f32 %v762_v38, %v105_v54 }
  0xaa   :  { %v219_v57 = vpop.permute.xlu1 %218 }
  0xab   :  { %v225_v58 = vadd.f32 %v762_v38, %v223_v56  ;;  %v222_v22 = vmul.f32 %v219_v57, %v731_v16  ;;  %v115_v10 = vmul.f32 0.2, %v113_v17 }
  0xad   :  { %v224_v60 = vadd.f32 %v222_v22, %v212_v59  ;;  %v227_v61 = vmul.f32 0.2, %v225_v58  ;;  %v117_v11 = vmax.f32 %v113_v17, %v115_v10 }
  0xaf   :  { %v226_v62 = vadd.f32 %v762_v38, %v224_v60  ;;  %v51_v63 = vpop.permute.xlu1 %50  ;;  %v229_v0 = vmax.f32 %v225_v58, %v227_v61 }
  0xb0   :  { %v58_v2 = vmul.f32 %v747_v25, %v51_v63 }
  0xb1   :  { %249 = vrot.lane.b32.xlu1 %v229_v0, %s649_s3  ;;  %v228_v1 = vmul.f32 0.2, %v226_v62 }
  0xb3   :  { %v230_v3 = vmax.f32 %v226_v62, %v228_v1 }
  0xb4   :  { %v65_v52 = vpop.permute.xlu1 %64 }
  0xb5   :  { %v72_v4 = vmul.f32 %v743_v24, %v65_v52  ;;  %251 = vrot.lane.b32.xlu0 %v230_v3, %s649_s3 }
  0xb7   :  { %v74_v5 = vadd.f32 %v72_v4, %v58_v2  ;;  %v291_v4 = vld [vmem:[#allocation2] sm:$0x1] }
  0xb9   :  { %v90_v6 = vadd.f32 %v753_v29, %v74_v5 }
  0xbb   :  { %v106_v16 = vadd.f32 %v750_v28, %v90_v6 }
  0xbd   :  { %v114_v7 = vadd.f32 %v762_v38, %v106_v16 }
  0xbf   :  { %v116_v38 = vmul.f32 0.2, %v114_v7 }
  0xc1   :  { %v118_v19 = vmax.f32 %v114_v7, %v116_v38 }
 0x108   :  { %v236_v25 = vpop.permute.xlu0 %235 }
 0x109   :  { %v257_v27 = vsel %vm255_vm8, %v118_v19, %v236_v25 }
 0x112   :  { %v234_v9 = vpop.permute.xlu1 %233 }
 0x113   :  { %v256_v13 = vsel %vm255_vm8, %v117_v11, %v234_v9 }
 0x116   :  { %v242_v29 = vpop.permute.xlu1 %241 }
 0x117   :  { %v259_v14 = vsel %vm258_vm7, %v256_v13, %v242_v29 }
 0x119   :  { %v244_v15 = vpop.permute.xlu0 %243 }
 0x11a   :  { %v260_v30 = vsel %vm258_vm7, %v257_v27, %v244_v15 }
 0x123   :  { %v250_v18 = vpop.permute.xlu1 %249 }
 0x124   :  { %v262_v21 = vsel %vm261_vm9, %v259_v14, %v250_v18 }
 0x125   :  { %v277_v26 = vsel %vm274_vm10, 0.0, %v262_v21 }
 0x126   :  { %565 = vmatmul.mubr.msk.f32.vlgmr.msra.gmra.mxu0 %vm298_vm11, %v277_v26 }
 0x127   :  { %v252_v31 = vpop.permute.xlu0 %251 }
 0x128   :  { %v263_v32 = vsel %vm261_vm9, %v260_v30, %v252_v31 }
 0x129   :  { %v278_v33 = vsel %vm274_vm10, 0.0, %v263_v32 }
 0x12a   :  { %584 = vmatmul.mubr.msk.f32.vlgmr.msra.gmra.mxu1 %vm298_vm11, %v278_v33 }
 0x1e6   :  { %v368_v36 = vpop.f32.mrf.mxu0 }
 0x1e7   :  { %v369_v37 = vadd.f32 %v525_v34, %v368_v36 }
 0x1e8   :  { %v566_v40 = vpop.f32.mrf.mxu0 }
 0x1e9   :  { %v378_v41 = vmul.f32 %v527_v35, %v369_v37 }
 0x1ea   :  { %v471_v42 = vpop.f32.mrf.mxu1 }
 0x1eb   :  { %v385_v43 = vadd.f32 %v528_v39, %v378_v41  ;;  %v472_v44 = vadd.f32 %v525_v34, %v471_v42 }
 0x1ec   :  { %v585_v45 = vpop.f32.mrf.mxu1 }
 0x1ed   :  { %v475_v46 = vmul.f32 %v527_v35, %v472_v44  ;;  %v386_v47 = vmul.f32 0.2, %v385_v43 }
 0x1ef   :  { %v476_v49 = vadd.f32 %v528_v39, %v475_v46  ;;  %v387_v50 = vmax.f32 %v385_v43, %v386_v47 }
 0x1f1   :  { %v388_v51 = vmul.f32 %v387_v50, %v290_v48  ;;  %v477_v53 = vmul.f32 0.2, %v476_v49 }
 0x1f3   :  { %v390_v54 = vsel %vm389_vm12, %v388_v51, 0.0  ;;  %v478_v23 = vmax.f32 %v476_v49, %v477_v53 }
 0x1f4   :  { %391 = vadd.xlane.f32.xlu1 %v390_v54 }
 0x1f5   :  { %v479_v55 = vmul.f32 %v478_v23, %v290_v48 }
 0x1f7   :  { %v480_v56 = vsel %vm389_vm12, %v479_v55, 0.0 }
 0x1f8   :  { %481 = vadd.xlane.f32.xlu0 %v480_v56 }
 0x27d   :  { %v392_v17 = vpop.xlane.xlu1 %391 }
 0x27e   :  { %v393_v57 = vrot.slane %v392_v17, 4 }
 0x280   :  { %v394_v58 = vadd.f32 %v393_v57, %v392_v17 }
 0x281   :  { %v482_v59 = vpop.xlane.xlu0 %481 }
 0x282   :  { %v395_v22 = vrot.slane %v394_v58, 2  ;;  %v483_v60 = vrot.slane %v482_v59, 4 }
 0x284   :  { %v484_v61 = vadd.f32 %v483_v60, %v482_v59  ;;  %v396_v62 = vadd.f32 %v395_v22, %v394_v58 }
 0x286   :  { %v485_v63 = vrot.slane %v484_v61, 2  ;;  %v397_v0 = vrot.slane %v396_v62, 1 }
 0x288   :  { %v398_v1 = vadd.f32 %v397_v0, %v396_v62  ;;  %v486_v2 = vadd.f32 %v485_v63, %v484_v61 }
 0x28a   :  { %586 = vpush %v398_v1  ;;  %v487_v3 = vrot.slane %v486_v2, 1 }
 0x28c   :  { %v488_v52 = vadd.f32 %v487_v3, %v486_v2 }
 0x28e   :  { %588 = vpush %v488_v52 }
 0x2bb   :  { %s587_s5 = spop %586 }
 0x2bc   :  { %v400_v5 = vstv %s587_s5 }
 0x2bd   :  { %v401_v6 = vadd.f32 %v400_v5, %v291_v4 }
 0x2bf   :  { %s589_s6 = spop %588 }
 0x2c0   :  { %v490_v16 = vstv %s589_s6 }
 0x2c1   :  { %v491_v7 = vadd.f32 %v490_v16, %v291_v4 }
 0x2c3   :  { %v496_v8 = vrot.slane %v491_v7, %v55_v20 }
 0x2c5   :  { %497 = vrot.lane.b32.xlu0 %v496_v8, %s650_s7 }
 0x337   :  { %v498_v9 = vpop.permute.xlu0 %497 }
 0x338   :  { %v501_v10 = vsel %vm500_vm13, %v401_v6, %v498_v9 }
 0x339   :  { %v502_v24 = vsub.f32 0.0, %v501_v10 }
 0x33b   :  { %v503_v25 = vmul.f32 1.442695, %v502_v24 }
 0x33d   :  { %615 = vpow2.f32 %v503_v25 }
 0x34a   :  { %v616_v29 = vpop.eup %615 }
 0x34b   :  { %v505_v28 = vadd.f32 1.0, %v616_v29 }
 0x34d   :  { %617 = vrcp.f32 %v505_v28 }
 0x35a   :  { %v618_v38 = vpop.eup %617 }
 0x35b   :  { %509 = vst.msk [vmem:[#allocation3] sm:$0x1] %vm508_vm14, %v618_v38 }
 0x35c   :  { %630 = shalt.err (!%p627_p4)
}
 0x35d   :  { %519 = dma.vmem_to_hbm [thread:$0]  %s517_s24, 16, %s892_s9, [#allocation4]  }
 0x35e   :  { %639 = dma.done.wait [#allocation4], 16  }
 0x35f   :  { %640 = vsyncadd [#allocation4], 4294967280 }
 0x360   :  { %523 = vsyncpa [#allocation4], 1 }

// kernel: discriminator_forward.2
= control target key start
LH: loop header
LB: loop body
LE: loop exit
PB: predicated region body
PF: predicated region fallthrough
CT: control target
= control target key end

     0   :  { %v560_v0 = vmov 3   ;;  %v561_v1 = vmov 2   ;;  %v562_v5 = vmov 0   ;;  %v563_v6 = vmov 1   ;;  %s566_s21 = smov 32   ;;  %s781_s0 = inlined_call_operand.vmem [shape: f32[2,6,4], index: 0, kind: input, shape index: {}]   ;;  %s782_s1 = inlined_call_operand.vmem [shape: f32[4,16], index: 1, kind: input, shape index: {}]   ;;  %s783_s2 = inlined_call_operand.vmem [shape: f32[1,16], index: 2, kind: input, shape index: {}]   ;;  %s784_s3 = inlined_call_operand.vmem [shape: f32[64,32], index: 3, kind: input, shape index: {}]   ;;  %s785_s5 = inlined_call_operand.vmem [shape: f32[2,32], index: 5, kind: output, shape index: {}]   ;;  %s786_s4 = inlined_call_operand.vmem [shape: f32[1,32], index: 4, kind: input, shape index: {}]  }
   0x1   :  { %547 = vset.pattern.permute.xlu1 %v560_v0  ;;  %546 = vset.pattern.permute.xlu0 %v561_v1  ;;  %v22_v2 = vld [vmem:[%s781_s0] sm:$0xf]  ;;  %v23_v3 = vld [vmem:[%s781_s0 + $0x8] sm:$0xf]  ;;  %v38_v10 = vlaneseq  ;;  %v564_v51 = vmov 0.0   ;;  %v271_v62 = vld [vmem:[%s784_s3 + $0x38] sm:$0xff] }
   0x2   :  { %77 = vperm.xlu1 %547, %v22_v2   ;;  %61 = vperm.xlu0 %546, %v22_v2   ;;  %v25_v4 = vld [vmem:[%s781_s0 + $0x9] sm:$0xf]  ;;  %v24_v7 = vld [vmem:[%s781_s0 + $0x1] sm:$0xf]  ;;  %v654_v37 = vld [vmem:[%s783_s2] ss:$0 sm:$0xff] }
   0x3   :  { %v27_v8 = vld [vmem:[%s781_s0 + $0xa] sm:$0xf]  ;;  %v26_v9 = vld [vmem:[%s781_s0 + $0x2] sm:$0xf]  ;;  %v618_v11 = vshrl.u32 %v38_v10, 7  ;;  %499 = vmatprep.subr.mxu0 %v564_v51  ;;  %518 = vmatprep.subr.mxu1 %v564_v51  ;;  %s565_s2 = smov 16  }
   0x4   :  { %v20_v13 = vld [vmem:[%s782_s1] sm:$0xf]  ;;  %v270_v63 = vld [vmem:[%s784_s3 + $0x30] sm:$0xff]  ;;  %500 = vmatpush3.msra.mxu0 %v271_v62  ;;  %519 = vmatpush3.msra.mxu1 %v271_v62  ;;  %vm567_vm0 = vmmov 0   ;;  %vm243_vm7 = vcmask 261120   ;;  %vm240_vm8 = vcmask 130048  }
   0x5   :  { %v86_v12 = vsub.s32 3, %v618_v11  ;;  %v70_v14 = vsub.s32 2, %v618_v11  ;;  %v54_v17 = vsub.s32 1, %v618_v11  ;;  %v40_v19 = vsub.s32 0, %v618_v11  ;;  %501 = vmatprep.subr.mxu0 %v564_v51  ;;  %520 = vmatprep.subr.mxu1 %v564_v51 }
   0x6   :  { %81 = vperm.xlu1 %547, %v23_v3   ;;  %65 = vperm.xlu0 %546, %v23_v3   ;;  %vm253_vm1 = vcmp.eq.s32.totalorder %v618_v11, 0  ;;  %vm256_vm3 = vcmp.eq.s32.totalorder %v618_v11, 3  ;;  %vm246_vm9 = vcmask 392192   ;;  %vm279_vm11 = vcmask 523264  }
   0x7   :  { %v625_v15 = vrot.slane %v20_v13, %v86_v12  ;;  %v627_v16 = vrot.slane %v20_v13, %v70_v14  ;;  %v637_v23 = vrot.slane %v20_v13, %v54_v17  ;;  %v639_v24 = vrot.slane %v20_v13, %v40_v19  ;;  %502 = vmatpush3.msra.mxu0 %v270_v63 }
   0x8   :  { %503 = vmatprep.subr.mxu0 %v564_v51  ;;  %521 = vmatpush3.msra.mxu1 %v270_v63  ;;  %vm465_vm12 = vcmask 254976   ;;  %vm353_vm13 = vcmask 257024   ;;  %vm468_vm14 = vcmask 1040384  }
   0x9   :  { %522 = vmatprep.subr.mxu1 %v564_v51  ;;  %515 = vmatprep.mubr.msk.f32.mxu0 %vm567_vm0, %v564_v51  ;;  %466 = vst.msk [vmem:[%s785_s5] sm:$0x3] %vm465_vm12, %v564_v51 }
   0xa   :  { %548 = vset.pattern.permute.xlu1 %v562_v5  ;;  %550 = vset.pattern.permute.xlu0 %v563_v6 }
   0xb   :  { %117 = vperm.xlu1 %548, %v25_v4   ;;  %129 = vperm.xlu0 %550, %v25_v4  }
   0xc   :  { %534 = vmatprep.mubr.msk.f32.mxu1 %vm567_vm0, %v564_v51 }
   0xf   :  { %549 = vset.pattern.permute.xlu1 %v563_v6  ;;  %552 = vset.pattern.permute.xlu0 %v560_v0 }
  0x10   :  { %125 = vperm.xlu1 %549, %v24_v7   ;;  %161 = vperm.xlu0 %552, %v24_v7  }
  0x14   :  { %551 = vset.pattern.permute.xlu1 %v561_v1  ;;  %553 = vset.pattern.permute.xlu0 %v562_v5 }
  0x15   :  { %149 = vperm.xlu1 %551, %v24_v7   ;;  %112 = vperm.xlu0 %553, %v24_v7  }
  0x19   :  { %153 = vperm.xlu1 %551, %v25_v4   ;;  %191 = vperm.xlu0 %553, %v27_v8  }
  0x1d   :  { %554 = vset.pattern.permute.xlu1 %v560_v0  ;;  %30 = vperm.xlu0 %553, %v22_v2  }
  0x1e   :  { %165 = vperm.xlu1 %554, %v25_v4  }
  0x21   :  { %558 = vset.pattern.permute.xlu0 %v563_v6 }
  0x22   :  { %555 = vset.pattern.permute.xlu1 %v562_v5  ;;  %45 = vperm.xlu0 %558, %v22_v2  }
  0x23   :  { %186 = vperm.xlu1 %555, %v26_v9  }
  0x27   :  { %556 = vset.pattern.permute.xlu1 %v563_v6 }
  0x28   :  { %199 = vperm.xlu1 %556, %v26_v9  }
  0x2c   :  { %203 = vperm.xlu1 %556, %v27_v8   ;;  %v268_v8 = vld [vmem:[%s784_s3 + $0x20] sm:$0xff] }
  0x30   :  { %557 = vset.pattern.permute.xlu1 %v562_v5  ;;  %v269_v5 = vld [vmem:[%s784_s3 + $0x28] sm:$0xff] }
  0x31   :  { %35 = vperm.xlu1 %557, %v23_v3   ;;  %504 = vmatpush3.msra.mxu0 %v269_v5 }
  0x32   :  { %505 = vmatprep.subr.mxu0 %v564_v51  ;;  %523 = vmatpush3.msra.mxu1 %v269_v5 }
  0x33   :  { %506 = vmatpush3.msra.mxu0 %v268_v8  ;;  %524 = vmatprep.subr.mxu1 %v564_v51 }
  0x34   :  { %507 = vmatprep.subr.mxu0 %v564_v51  ;;  %525 = vmatpush3.msra.mxu1 %v268_v8 }
  0x35   :  { %559 = vset.pattern.permute.xlu1 %v563_v6  ;;  %526 = vmatprep.subr.mxu1 %v564_v51 }
  0x36   :  { %49 = vperm.xlu1 %559, %v23_v3  }
  0x7d   :  { %v78_v18 = vpop.permute.xlu1 %77  ;;  %v62_v20 = vpop.permute.xlu0 %61 }
  0x7e   :  { %v632_v21 = vmul.f32 %v625_v15, %v78_v18  ;;  %v635_v22 = vmul.f32 %v627_v16, %v62_v20  ;;  %v106_v41 = vmul.f32 %v78_v18, %v637_v23  ;;  %v104_v42 = vmul.f32 %v62_v20, %v639_v24  ;;  %v267_v18 = vld [vmem:[%s784_s3 + $0x18] sm:$0xff] }
  0x7f   :  { %508 = vmatpush3.msra.mxu0 %v267_v18  ;;  %527 = vmatpush3.msra.mxu1 %v267_v18 }
  0x80   :  { %v108_v47 = vadd.f32 %v106_v41, %v104_v42  ;;  %509 = vmatprep.subr.mxu0 %v564_v51  ;;  %528 = vmatprep.subr.mxu1 %v564_v51 }
  0x81   :  { %v82_v25 = vpop.permute.xlu1 %81  ;;  %v66_v26 = vpop.permute.xlu0 %65 }
  0x82   :  { %v642_v27 = vmul.f32 %v625_v15, %v82_v25  ;;  %v645_v28 = vmul.f32 %v627_v16, %v66_v26  ;;  %v107_v29 = vmul.f32 %v82_v25, %v637_v23  ;;  %v105_v30 = vmul.f32 %v66_v26, %v639_v24 }
  0x84   :  { %v109_v33 = vadd.f32 %v107_v29, %v105_v30  ;;  %v266_v29 = vld [vmem:[%s784_s3 + $0x10] sm:$0xff] }
  0x85   :  { %510 = vmatpush3.msra.mxu0 %v266_v29  ;;  %529 = vmatpush3.msra.mxu1 %v266_v29 }
  0x86   :  { %v118_v31 = vpop.permute.xlu1 %117  ;;  %v130_v32 = vpop.permute.xlu0 %129  ;;  %511 = vmatprep.subr.mxu0 %v564_v51  ;;  %530 = vmatprep.subr.mxu1 %v564_v51 }
  0x87   :  { %v121_v34 = vmul.f32 %v118_v31, %v627_v16  ;;  %v133_v35 = vmul.f32 %v130_v32, %v625_v15  ;;  %v143_v58 = vmul.f32 %v118_v31, %v639_v24  ;;  %v145_v59 = vmul.f32 %v130_v32, %v637_v23 }
  0x89   :  { %v123_v36 = vadd.f32 %v121_v34, %v109_v33  ;;  %v147_v6 = vadd.f32 %v145_v59, %v143_v58 }
  0x8b   :  { %v135_v38 = vadd.f32 %v133_v35, %v123_v36  ;;  %v126_v39 = vpop.permute.xlu1 %125  ;;  %v656_v40 = vpop.permute.xlu0 %161  ;;  %v265_v36 = vld [vmem:[%s784_s3 + $0x8] sm:$0xff] }
  0x8c   :  { %v144_v48 = vmul.f32 %v126_v39, %v637_v23  ;;  %v132_v52 = vmul.f32 %v126_v39, %v625_v15  ;;  %v168_v54 = vmul.f32 %v656_v40, %v625_v15  ;;  %v180_v30 = vmul.f32 %v656_v40, %v637_v23  ;;  %512 = vmatpush3.msra.mxu0 %v265_v36 }
  0x8d   :  { %v137_v43 = vadd.f32 %v654_v37, %v135_v38  ;;  %513 = vmatprep.subr.mxu0 %v564_v51  ;;  %531 = vmatpush3.msra.mxu1 %v265_v36 }
  0x8e   :  { %532 = vmatprep.subr.mxu1 %v564_v51 }
  0x8f   :  { %v139_v44 = vmul.f32 0.2, %v137_v43 }
  0x90   :  { %v661_v45 = vpop.permute.xlu1 %149  ;;  %v113_v46 = vpop.permute.xlu0 %112 }
  0x91   :  { %v120_v49 = vmul.f32 %v113_v46, %v627_v16  ;;  %v142_v50 = vmul.f32 %v113_v46, %v639_v24  ;;  %v141_v53 = vmax.f32 %v137_v43, %v139_v44  ;;  %v156_v55 = vmul.f32 %v661_v45, %v627_v16 }
  0x92   :  { %v178_v32 = vmul.f32 %v661_v45, %v639_v24 }
  0x93   :  { %v122_v56 = vadd.f32 %v120_v49, %v108_v47  ;;  %v146_v57 = vadd.f32 %v144_v48, %v142_v50  ;;  %220 = vrot.lane.b32.xlu0 %v141_v53, %s565_s2  ;;  %v264_v47 = vld [vmem:[%s784_s3] sm:$0xff]  ;;  %s568_s3 = smov 48  }
  0x94   :  { %v154_v60 = vpop.permute.xlu1 %153  ;;  %v676_v61 = vpop.permute.xlu0 %191  ;;  %v182_v44 = vadd.f32 %v180_v30, %v178_v32  ;;  %514 = vmatpush3.msra.mxu0 %v264_v47  ;;  %533 = vmatpush3.msra.mxu1 %v264_v47 }
  0x95   :  { %v134_v0 = vadd.f32 %v132_v52, %v122_v56  ;;  %v158_v1 = vadd.f32 %v156_v55, %v146_v57  ;;  %v157_v2 = vmul.f32 %v154_v60, %v627_v16  ;;  %v179_v43 = vmul.f32 %v154_v60, %v639_v24 }
  0x96   :  { %v195_v48 = vmul.f32 %v676_v61, %v627_v16 }
  0x97   :  { %v170_v3 = vadd.f32 %v168_v54, %v158_v1  ;;  %v136_v4 = vadd.f32 %v654_v37, %v134_v0  ;;  %v159_v14 = vadd.f32 %v157_v2, %v147_v6 }
  0x98   :  { %v31_v7 = vpop.permute.xlu0 %30 }
  0x99   :  { %v166_v9 = vpop.permute.xlu1 %165  ;;  %v138_v12 = vmul.f32 0.2, %v136_v4  ;;  %v172_v13 = vadd.f32 %v654_v37, %v170_v3  ;;  %v42_v26 = vmul.f32 %v639_v24, %v31_v7  ;;  %v252_v7 = vand.u32 127, %v38_v10 }
  0x9a   :  { %v169_v17 = vmul.f32 %v166_v9, %v625_v15  ;;  %v181_v38 = vmul.f32 %v166_v9, %v637_v23 }
  0x9b   :  { %v140_v19 = vmax.f32 %v136_v4, %v138_v12  ;;  %v174_v20 = vmul.f32 0.2, %v172_v13  ;;  %vm254_vm2 = vcmp.lt.s32.totalorder %v252_v7, 16  ;;  %vm257_vm4 = vcmp.ge.s32.totalorder %v252_v7, 48 }
  0x9c   :  { %v171_v25 = vadd.f32 %v169_v17, %v159_v14  ;;  %v183_v49 = vadd.f32 %v181_v38, %v179_v43  ;;  %vm750_vm5 = vmand %vm253_vm1, %vm254_vm2 }
  0x9d   :  { %218 = vrot.lane.b32.xlu1 %v140_v19, %s565_s2  ;;  %v46_v31 = vpop.permute.xlu0 %45  ;;  %v176_v39 = vmax.f32 %v172_v13, %v174_v20  ;;  %vm754_vm6 = vmand %vm256_vm3, %vm257_vm4 }
  0x9e   :  { %v173_v33 = vadd.f32 %v654_v37, %v171_v25  ;;  %v56_v34 = vmul.f32 %v637_v23, %v46_v31  ;;  %v187_v35 = vpop.permute.xlu1 %186  ;;  %v197_v57 = vadd.f32 %v195_v48, %v183_v49  ;;  %vm259_vm10 = vmor %vm750_vm5, %vm754_vm6  ;;  %v478_v31 = vld [vmem:[%s786_s4] ss:$0 sm:$0xff] }
  0x9f   :  { %v194_v41 = vmul.f32 %v187_v35, %v627_v16 }
  0xa0   :  { %v58_v40 = vadd.f32 %v56_v34, %v42_v26  ;;  %v175_v42 = vmul.f32 0.2, %v173_v33 }
  0xa1   :  { %226 = vrot.lane.b32.xlu1 %v176_v39, %s566_s21 }
  0xa2   :  { %v74_v45 = vadd.f32 %v635_v22, %v58_v40  ;;  %v177_v46 = vmax.f32 %v173_v33, %v175_v42  ;;  %v196_v22 = vadd.f32 %v194_v41, %v182_v44 }
  0xa3   :  { %v200_v50 = vpop.permute.xlu1 %199 }
  0xa4   :  { %v90_v52 = vadd.f32 %v632_v21, %v74_v45  ;;  %v206_v53 = vmul.f32 %v200_v50, %v625_v15  ;;  %228 = vrot.lane.b32.xlu0 %v177_v46, %s566_s21 }
  0xa6   :  { %v208_v54 = vadd.f32 %v206_v53, %v196_v22  ;;  %v98_v16 = vadd.f32 %v654_v37, %v90_v52 }
  0xa7   :  { %v204_v55 = vpop.permute.xlu1 %203 }
  0xa8   :  { %v210_v56 = vadd.f32 %v654_v37, %v208_v54  ;;  %v207_v21 = vmul.f32 %v204_v55, %v625_v15  ;;  %v100_v9 = vmul.f32 0.2, %v98_v16 }
  0xaa   :  { %v209_v58 = vadd.f32 %v207_v21, %v197_v57  ;;  %v212_v59 = vmul.f32 0.2, %v210_v56  ;;  %v102_v10 = vmax.f32 %v98_v16, %v100_v9 }
  0xac   :  { %v211_v60 = vadd.f32 %v654_v37, %v209_v58  ;;  %v36_v61 = vpop.permute.xlu1 %35  ;;  %v214_v62 = vmax.f32 %v210_v56, %v212_v59 }
  0xad   :  { %v43_v0 = vmul.f32 %v639_v24, %v36_v61 }
  0xae   :  { %234 = vrot.lane.b32.xlu1 %v214_v62, %s568_s3  ;;  %v213_v63 = vmul.f32 0.2, %v211_v60 }
  0xb0   :  { %v215_v1 = vmax.f32 %v211_v60, %v213_v63 }
  0xb1   :  { %v50_v2 = vpop.permute.xlu1 %49 }
  0xb2   :  { %v57_v3 = vmul.f32 %v637_v23, %v50_v2  ;;  %236 = vrot.lane.b32.xlu0 %v215_v1, %s568_s3 }
  0xb4   :  { %v59_v4 = vadd.f32 %v57_v3, %v43_v0 }
  0xb6   :  { %v75_v5 = vadd.f32 %v645_v28, %v59_v4  ;;  %v467_v4 = vld [vmem:[%s785_s5] sm:$0x3] }
  0xb8   :  { %v91_v15 = vadd.f32 %v642_v27, %v75_v5 }
  0xba   :  { %v99_v6 = vadd.f32 %v654_v37, %v91_v15 }
  0xbc   :  { %v101_v37 = vmul.f32 0.2, %v99_v6 }
  0xbe   :  { %v103_v17 = vmax.f32 %v99_v6, %v101_v37 }
 0x105   :  { %v221_v24 = vpop.permute.xlu0 %220 }
 0x106   :  { %v242_v20 = vsel %vm240_vm8, %v103_v17, %v221_v24 }
 0x10f   :  { %v219_v8 = vpop.permute.xlu1 %218 }
 0x110   :  { %v241_v12 = vsel %vm240_vm8, %v102_v10, %v219_v8 }
 0x113   :  { %v227_v28 = vpop.permute.xlu1 %226 }
 0x114   :  { %v244_v11 = vsel %vm243_vm7, %v241_v12, %v227_v28 }
 0x116   :  { %v229_v13 = vpop.permute.xlu0 %228 }
 0x117   :  { %v245_v25 = vsel %vm243_vm7, %v242_v20, %v229_v13 }
 0x120   :  { %v235_v14 = vpop.permute.xlu1 %234 }
 0x121   :  { %v247_v18 = vsel %vm246_vm9, %v244_v11, %v235_v14 }
 0x122   :  { %v262_v19 = vsel %vm259_vm10, 0.0, %v247_v18 }
 0x123   :  { %516 = vmatmul.mubr.msk.f32.vlgmr.msra.gmra.mxu0 %vm279_vm11, %v262_v19 }
 0x124   :  { %v237_v26 = vpop.permute.xlu0 %236 }
 0x125   :  { %v248_v29 = vsel %vm246_vm9, %v245_v25, %v237_v26 }
 0x126   :  { %v263_v30 = vsel %vm259_vm10, 0.0, %v248_v29 }
 0x127   :  { %535 = vmatmul.mubr.msk.f32.vlgmr.msra.gmra.mxu1 %vm279_vm11, %v263_v30 }
 0x1e3   :  { %v349_v32 = vpop.f32.mrf.mxu0 }
 0x1e4   :  { %v350_v33 = vadd.f32 %v478_v31, %v349_v32 }
 0x1e5   :  { %v517_v34 = vpop.f32.mrf.mxu0 }
 0x1e6   :  { %v354_v35 = vsel %vm353_vm13, %v350_v33, 0.0  ;;  %v362_v36 = vmul.f32 %v350_v33, %v350_v33 }
 0x1e7   :  { %v355_v38 = vrot.slane %v354_v35, 4  ;;  %v440_v39 = vpop.f32.mrf.mxu1 }
 0x1e8   :  { %v363_v40 = vsel %vm353_vm13, %v362_v36, 0.0  ;;  %v441_v41 = vadd.f32 %v478_v31, %v440_v39 }
 0x1e9   :  { %v356_v42 = vadd.f32 %v355_v38, %v354_v35  ;;  %v364_v43 = vrot.slane %v363_v40, 4  ;;  %v536_v44 = vpop.f32.mrf.mxu1 }
 0x1ea   :  { %v444_v51 = vsel %vm353_vm13, %v441_v41, 0.0  ;;  %v452_v45 = vmul.f32 %v441_v41, %v441_v41 }
 0x1eb   :  { %v357_v46 = vrot.slane %v356_v42, 2  ;;  %v365_v47 = vadd.f32 %v364_v43, %v363_v40  ;;  %v445_v48 = vrot.slane %v444_v51, 4 }
 0x1ec   :  { %v453_v49 = vsel %vm353_vm13, %v452_v45, 0.0 }
 0x1ed   :  { %v366_v50 = vrot.slane %v365_v47, 2  ;;  %v446_v52 = vadd.f32 %v445_v48, %v444_v51  ;;  %v454_v22 = vrot.slane %v453_v49, 4  ;;  %v358_v53 = vadd.f32 %v357_v46, %v356_v42 }
 0x1ef   :  { %v367_v54 = vadd.f32 %v366_v50, %v365_v47  ;;  %v447_v16 = vrot.slane %v446_v52, 2  ;;  %v455_v55 = vadd.f32 %v454_v22, %v453_v49  ;;  %v359_v21 = vrot.slane %v358_v53, 1 }
 0x1f1   :  { %v448_v56 = vadd.f32 %v447_v16, %v446_v52  ;;  %v456_v57 = vrot.slane %v455_v55, 2  ;;  %v368_v58 = vrot.slane %v367_v54, 1  ;;  %v360_v63 = vadd.f32 %v359_v21, %v358_v53 }
 0x1f3   :  { %v449_v59 = vrot.slane %v448_v56, 1  ;;  %v457_v60 = vadd.f32 %v456_v57, %v455_v55  ;;  %v369_v0 = vadd.f32 %v368_v58, %v367_v54 }
 0x1f5   :  { %v450_v61 = vadd.f32 %v449_v59, %v448_v56  ;;  %v458_v62 = vrot.slane %v457_v60, 1 }
 0x1f7   :  { %v459_v1 = vadd.f32 %v458_v62, %v457_v60  ;;  %v451_v2 = vadd.f32 %v450_v61, %v360_v63 }
 0x1f9   :  { %v460_v3 = vadd.f32 %v459_v1, %v369_v0 }
 0x1fb   :  { %v469_v5 = vsel %vm468_vm14, %v451_v2, %v460_v3 }
 0x1fc   :  { %v470_v15 = vadd.f32 %v469_v5, %v467_v4 }
 0x1fe   :  { %472 = vst.msk [vmem:[%s785_s5] sm:$0x3] %vm465_vm12, %v470_v15 }

</bundles_post_ra>
